<compile_context>
chip_gen: v6e
topology: v6e:2x2x1
jax: 0.10.0
libtpu: 0.0.40
codegen_flags: <defaults>
</compile_context>

<pallas_src>
import functools
import math

import jax
import jax.numpy as jnp
from jax.experimental import pallas as pl
from jax.experimental.pallas import tpu as pltpu


def _round_up(x, m):
    return ((x + m - 1) // m) * m


# ------------------------- generation-aware VMEM budgeting --------------------------
def _gen_limits():
    cap = None
    try:
        info = pltpu.get_tpu_info()
        for name in ("vmem_capacity_bytes", "vmem_size_bytes", "vmem_bytes"):
            cap = getattr(info, name, None)
            if cap:
                break
    except Exception:
        cap = None
    cap = int(cap) if cap else (64 << 20)      # unknown -> assume v7x-sized VMEM
    if cap >= (96 << 20):                      # v5e / v6e: 128 MiB physical VMEM
        return dict(vmem_limit=96 << 20, block_budget=72 << 20, max_rows=512)
    # v7x (64 MiB physical): conservative budget; weights are single-buffered anyway.
    return dict(vmem_limit=48 << 20, block_budget=36 << 20, max_rows=256)


def _choose_batch_tile(batch, row_bytes, *, sublane, max_rows, budget_bytes):
    """Pick a batch tile (multiple of `sublane`) whose per-tile working set fits the
    budget, and a padded batch it divides evenly.  Single-step batches are trimmed so
    no junk rows beyond sublane padding are computed."""
    budget_rows = max(sublane,
                      (max(budget_bytes, 0) // max(row_bytes, 1)) // sublane * sublane)
    tm = max(sublane, min(max_rows, budget_rows))
    b_pad = _round_up(batch, sublane)
    if b_pad <= tm:
        tm = b_pad
    b_pad = _round_up(b_pad, tm)
    return tm, b_pad


# --------------------------- shared head math (in-kernel) ---------------------------
def _head_math(f_cat, w_proj, b_proj, ln_g, ln_b, w1, b1, w2, b2, w3, b3, eps,
               *, action_dim, log_std_min, log_std_max):
    # proj: Linear(5*feature_dim, projection_dim) (bf16 MXU, f32 accum) + LayerNorm (f32)
    h = jnp.dot(f_cat.astype(jnp.bfloat16), w_proj,
                preferred_element_type=jnp.float32) + b_proj
    mean = jnp.mean(h, axis=-1, keepdims=True)
    var = jnp.mean(jnp.square(h - mean), axis=-1, keepdims=True)
    h = (h - mean) * jax.lax.rsqrt(var + 1e-5) * ln_g + ln_b

    # pi MLP: Linear + ReLU + Linear + ReLU + Linear(-> 2*action_dim), bf16 MXU
    h = jnp.maximum(jnp.dot(h.astype(jnp.bfloat16), w1,
                            preferred_element_type=jnp.float32) + b1, 0.0)
    h = jnp.maximum(jnp.dot(h.astype(jnp.bfloat16), w2,
                            preferred_element_type=jnp.float32) + b2, 0.0)
    mu_ls = jnp.dot(h.astype(jnp.bfloat16), w3,
                    preferred_element_type=jnp.float32) + b3      # (tm, 2*A)
    mu = mu_ls[:, :action_dim]                                    # chunk(2, -1)
    ls_raw = mu_ls[:, action_dim:]

    log_std = log_std_min + 0.5 * (log_std_max - log_std_min) * (jnp.tanh(ls_raw) + 1.0)
    std = jnp.exp(log_std)
    pi = eps * std + mu
    log_pi = jnp.sum(-0.5 * eps * eps - log_std, axis=-1, keepdims=True) \
             - 0.5 * math.log(2.0 * math.pi) * action_dim
    mu_t = jnp.tanh(mu)
    pi_t = jnp.tanh(pi)
    log_pi = log_pi - jnp.sum(
        jnp.log(jnp.maximum(1.0 - pi_t * pi_t, 0.0) + 1e-6), axis=-1, keepdims=True)
    return mu_t, log_std, pi_t, log_pi


# ---------------------------- fused obs -> actor kernel -----------------------------
def _fused_actor_kernel(x_ref, w_enc_ref, b_enc_ref,
                        w_proj_ref, b_proj_ref, ln_g_ref, ln_b_ref,
                        w1_ref, b1_ref, w2_ref, b2_ref, w3_ref, b3_ref,
                        eps_ref, f_out_ref, head_out_ref,
                        *, nf, K, action_dim, log_std_min, log_std_max,
                        f_pad, head_pad):
    w_enc = w_enc_ref[...]                       # bf16, /255 pre-folded
    b_enc = b_enc_ref[...]                       # f32 (1, F)

    # Synthetic linear encoder: one contiguous lane-slice (= one frame) per MXU pass.
    # uint8 pixels -> widen via int32/f32 (safe converts) -> bf16 feed, f32 accumulation.
    zs = []
    for t in range(nf):
        x_t = (x_ref[:, t * K:(t + 1) * K]
               .astype(jnp.int32).astype(jnp.float32).astype(jnp.bfloat16))
        zs.append(jnp.dot(x_t, w_enc, preferred_element_type=jnp.float32) + b_enc)

    # delta_t = z_t - stop_grad(z_{t-1}); stop_gradient is a no-op in this forward pass.
    deltas = [zs[t] - zs[t - 1] for t in range(1, nf)]
    f_cat = jnp.concatenate(zs + deltas, axis=-1)          # (tm, (2*nf-1)*F), f32

    mu_t, log_std, pi_t, log_pi = _head_math(
        f_cat, w_proj_ref[...], b_proj_ref[...], ln_g_ref[...], ln_b_ref[...],
        w1_ref[...], b1_ref[...], w2_ref[...], b2_ref[...], w3_ref[...], b3_ref[...],
        eps_ref[...],
        action_dim=action_dim, log_std_min=log_std_min, log_std_max=log_std_max)

    rows = f_cat.shape[0]
    # Two lane-dense, 128-multiple-wide stores: f gets its own aligned slab.
    if f_pad:
        f_out_ref[...] = jnp.concatenate(
            [f_cat, jnp.zeros((rows, f_pad), jnp.float32)], axis=-1)
    else:
        f_out_ref[...] = f_cat
    head = [mu_t, log_std, pi_t, log_pi]
    if head_pad:
        head.append(jnp.zeros((rows, head_pad), jnp.float32))
    head_out_ref[...] = jnp.concatenate(head, axis=-1)


# ------------------------- head-only kernel (from_obs=False) ------------------------
def _head_only_kernel(f_ref, w_proj_ref, b_proj_ref, ln_g_ref, ln_b_ref,
                      w1_ref, b1_ref, w2_ref, b2_ref, w3_ref, b3_ref,
                      eps_ref, head_out_ref,
                      *, action_dim, log_std_min, log_std_max, head_pad):
    mu_t, log_std, pi_t, log_pi = _head_math(
        f_ref[...].astype(jnp.float32), w_proj_ref[...], b_proj_ref[...],
        ln_g_ref[...], ln_b_ref[...],
        w1_ref[...], b1_ref[...], w2_ref[...], b2_ref[...], w3_ref[...], b3_ref[...],
        eps_ref[...],
        action_dim=action_dim, log_std_min=log_std_min, log_std_max=log_std_max)
    head = [mu_t, log_std, pi_t, log_pi]
    if head_pad:
        head.append(jnp.zeros((mu_t.shape[0], head_pad), jnp.float32))
    head_out_ref[...] = jnp.concatenate(head, axis=-1)


# ---------------------------------- Actor forward -----------------------------------
def actor_forward(inputs, params, epsilon, *, feature_dim, action_dim,
                  log_std_min, log_std_max, from_obs=True):
    A = action_dim
    limits = _gen_limits()
    cparams = pltpu.CompilerParams(dimension_semantics=("parallel",),
                                   vmem_limit_bytes=limits["vmem_limit"])
    # Unblocked VMEM operands: fetched once, single copy, outside the pipeline.
    vmem_spec = pl.BlockSpec(memory_space=pltpu.MemorySpace.VMEM)
    row2 = lambda i: (i, 0)

    if from_obs:
        assert inputs.ndim == 4, "Inputs must be Bx3*nb_framesxHxW"
        assert inputs.shape[1] % 3 == 0, "Inputs must be stacked RGB frames"
        B, C, H, W = inputs.shape
        nf = C // 3
        K = 3 * H * W
        n_f = (2 * nf - 1) * feature_dim
        assert params["w_proj_mxu"].shape[0] == n_f

        # Free contiguous reshape; frames are contiguous K-wide lane ranges.
        x = inputs.reshape(B, nf * K)
        itemsize = jnp.dtype(x.dtype).itemsize
        sublane = {1: 32, 2: 16, 4: 8}.get(itemsize, 8)

        f_w = _round_up(n_f, 128)
        head_w = _round_up(3 * A + 1, 128)

        weights = (params["w_enc_mxu"], params["b_enc"],
                   params["w_proj_mxu"], params["b_proj"],
                   params["ln_gamma"], params["ln_beta"],
                   params["w1_mxu"], params["b1"], params["w2_mxu"], params["b2"],
                   params["w3_mxu"], params["b3"])
        weight_bytes = sum(int(w.size) * jnp.dtype(w.dtype).itemsize for w in weights)

        # Per-batch-row working set: double-buffered x/out/eps blocks + in-kernel temps.
        row_bytes = (2 * nf * K * itemsize + 2 * (f_w + head_w + A) * 4
                     + 2 * K * 2 + 6 * n_f * 4)
        tm, padded_B = _choose_batch_tile(
            B, row_bytes, sublane=sublane, max_rows=limits["max_rows"],
            budget_bytes=limits["block_budget"] - weight_bytes)

        if padded_B != B:
            x = jnp.pad(x, ((0, padded_B - B), (0, 0)))
            eps = jnp.pad(epsilon, ((0, padded_B - B), (0, 0)))
        else:
            eps = epsilon

        kernel = functools.partial(
            _fused_actor_kernel, nf=nf, K=K, action_dim=A,
            log_std_min=log_std_min, log_std_max=log_std_max,
            f_pad=f_w - n_f, head_pad=head_w - (3 * A + 1))

        # TODO(synk): on v7x, optionally sweep pipeline_mode=pl.Buffered(3) on the x spec
        # now that per-tile DMAs are uint8-sized; default double-buffering kept here.
        in_specs = ([pl.BlockSpec((tm, nf * K), row2)]
                    + [vmem_spec] * len(weights)
                    + [pl.BlockSpec((tm, A), row2)])
        out_specs = [pl.BlockSpec((tm, f_w), row2),
                     pl.BlockSpec((tm, head_w), row2)]

        out_f, out_head = pl.pallas_call(
            kernel,
            out_shape=(jax.ShapeDtypeStruct((padded_B, f_w), jnp.float32),
                       jax.ShapeDtypeStruct((padded_B, head_w), jnp.float32)),
            grid_spec=pltpu.PrefetchScalarGridSpec(
                num_scalar_prefetch=0,
                grid=(padded_B // tm,),
                in_specs=in_specs,
                out_specs=out_specs),
            compiler_params=cparams,
        )(x, *weights, eps)

        # freeze_encoder=True path (torch.no_grad) -> stop_gradient on features.
        f = jax.lax.stop_gradient(out_f[:B, :n_f])
        mu = out_head[:B, :A]
        log_std = out_head[:B, A:2 * A]
        pi = out_head[:B, 2 * A:3 * A]
        log_pi = out_head[:B, 3 * A:3 * A + 1]
        return mu, log_std, pi, log_pi, f

    # from_obs=False: inputs are already features f
    f_in = inputs
    B, n_f = f_in.shape
    assert params["w_proj_mxu"].shape[0] == n_f
    head_w = _round_up(3 * A + 1, 128)

    weights = (params["w_proj_mxu"], params["b_proj"],
               params["ln_gamma"], params["ln_beta"],
               params["w1_mxu"], params["b1"], params["w2_mxu"], params["b2"],
               params["w3_mxu"], params["b3"])
    weight_bytes = sum(int(w.size) * jnp.dtype(w.dtype).itemsize for w in weights)
    row_bytes = 2 * n_f * 4 + 2 * (head_w + A) * 4 + 4 * n_f * 4
    tm, padded_B = _choose_batch_tile(
        B, row_bytes, sublane=8, max_rows=limits["max_rows"],
        budget_bytes=limits["block_budget"] - weight_bytes)

    if padded_B != B:
        f_pad_arr = jnp.pad(f_in, ((0, padded_B - B), (0, 0)))
        eps = jnp.pad(epsilon, ((0, padded_B - B), (0, 0)))
    else:
        f_pad_arr, eps = f_in, epsilon

    kernel = functools.partial(
        _head_only_kernel, action_dim=A,
        log_std_min=log_std_min, log_std_max=log_std_max,
        head_pad=head_w - (3 * A + 1))

    in_specs = ([pl.BlockSpec((tm, n_f), row2)]
                + [vmem_spec] * len(weights)
                + [pl.BlockSpec((tm, A), row2)])

    out_head = pl.pallas_call(
        kernel,
        out_shape=jax.ShapeDtypeStruct((padded_B, head_w), jnp.float32),
        grid_spec=pltpu.PrefetchScalarGridSpec(
            num_scalar_prefetch=0,
            grid=(padded_B // tm,),
            in_specs=in_specs,
            out_specs=pl.BlockSpec((tm, head_w), row2)),
        compiler_params=cparams,
    )(f_pad_arr, *weights, eps)

    mu = out_head[:B, :A]
    log_std = out_head[:B, A:2 * A]
    pi = out_head[:B, 2 * A:3 * A]
    log_pi = out_head[:B, 3 * A:3 * A + 1]
    return mu, log_std, pi, log_pi, f_in


# ----------------------------------- parameter init ---------------------------------
def _orthogonal_in_out(key, in_dim, out_dim):
    # Mimic nn.init.orthogonal_ on torch weight (out, in); stored here as (in, out).
    n, m = max(in_dim, out_dim), min(in_dim, out_dim)
    a = jax.random.normal(key, (n, m), dtype=jnp.float32)
    q, r = jnp.linalg.qr(a)
    q = q * jnp.sign(jnp.diagonal(r))
    return q if in_dim >= out_dim else q.T


def _linear_default(key, in_dim, out_dim):
    # torch Linear default: U(-1/sqrt(in), 1/sqrt(in))
    bound = 1.0 / math.sqrt(in_dim)
    kw, kb = jax.random.split(key)
    w = jax.random.uniform(kw, (in_dim, out_dim), jnp.float32, -bound, bound)
    b = jax.random.uniform(kb, (1, out_dim), jnp.float32, -bound, bound)
    return w, b


def init_params(key, *, in_flat, feature_dim, projection_dim, hidden_dim, action_dim):
    keys = jax.random.split(key, 8)
    w_enc, b_enc = _linear_default(keys[0], in_flat, feature_dim)
    w_proj, b_proj = _linear_default(keys[1], 5 * feature_dim, projection_dim)
    w1 = _orthogonal_in_out(keys[2], projection_dim, hidden_dim)
    w2 = _orthogonal_in_out(keys[3], hidden_dim, hidden_dim)
    w3 = _orthogonal_in_out(keys[4], hidden_dim, 2 * action_dim)
    return dict(
        # f32 canonical parameters
        w_enc=w_enc, b_enc=b_enc,
        w_proj=w_proj, b_proj=b_proj,
        ln_gamma=jnp.ones((1, projection_dim), jnp.float32),
        ln_beta=jnp.zeros((1, projection_dim), jnp.float32),
        w1=w1, b1=jnp.zeros((1, hidden_dim), jnp.float32),
        w2=w2, b2=jnp.zeros((1, hidden_dim), jnp.float32),
        w3=w3, b3=jnp.zeros((1, 2 * action_dim), jnp.float32),
        # bf16 MXU copies (f32 accumulation in-kernel).
        # TODO(synk): the torch reference divides by 255 only when inputs.max() > 1;
        # with uint8 pixel observations that branch is always taken, so folding /255
        # into the encoder weight is exact for this input type.
        w_enc_mxu=(w_enc * (1.0 / 255.0)).astype(jnp.bfloat16),
        w_proj_mxu=w_proj.astype(jnp.bfloat16),
        w1_mxu=w1.astype(jnp.bfloat16),
        w2_mxu=w2.astype(jnp.bfloat16),
        w3_mxu=w3.astype(jnp.bfloat16),
    )


# --------------------------------------- main ---------------------------------------
if __name__ == "__main__":
    B, nb_frames, H, W = 2, 3, 16, 16            # channels = 3*nb_frames = 9
    feature_dim, projection_dim, hidden_dim = 32, 32, 32
    action_dim = 4
    log_std_min, log_std_max = -10.0, 2.0

    key = jax.random.PRNGKey(0)
    k_obs, k_eps, k_par = jax.random.split(key, 3)

    # uint8 pixel observations (0..255): 4x less HBM DMA than f32 into the kernel.
    obs = jax.random.randint(k_obs, (B, 3 * nb_frames, H, W), 0, 256,
                             dtype=jnp.int32).astype(jnp.uint8)
    # torch draws epsilon in-forward with randn_like; here it is an explicit input.
    epsilon = jax.random.normal(k_eps, (B, action_dim), jnp.float32)

    params = init_params(k_par, in_flat=3 * H * W, feature_dim=feature_dim,
                         projection_dim=projection_dim, hidden_dim=hidden_dim,
                         action_dim=action_dim)

    mu, log_std, pi, log_pi, f = actor_forward(
        obs, params, epsilon,
        feature_dim=feature_dim, action_dim=action_dim,
        log_std_min=log_std_min, log_std_max=log_std_max, from_obs=True)
    jax.block_until_ready((mu, log_std, pi, log_pi, f))

    assert mu.shape == (B, action_dim)
    assert log_std.shape == (B, action_dim)
    assert pi.shape == (B, action_dim)
    assert log_pi.shape == (B, 1)
    assert f.shape == (B, 5 * feature_dim)
    assert bool(jnp.all(jnp.isfinite(mu))) and bool(jnp.all(jnp.isfinite(log_pi)))

    # from_obs=False path (head-only kernel) must reproduce the fused head on the same f.
    mu2, log_std2, pi2, log_pi2, _ = actor_forward(
        f, params, epsilon,
        feature_dim=feature_dim, action_dim=action_dim,
        log_std_min=log_std_min, log_std_max=log_std_max, from_obs=False)
    jax.block_until_ready((mu2, log_std2, pi2, log_pi2))
    assert jnp.allclose(mu, mu2, atol=1e-4, rtol=1e-4)
    assert jnp.allclose(pi, pi2, atol=1e-4, rtol=1e-4)
    assert jnp.allclose(log_pi, log_pi2, atol=1e-3, rtol=1e-3)

    print("KERNEL_OK")
</pallas_src>

<mosaic_0001>
module attributes {stable_mosaic.version = 11 : i64} {
  func.func @_fused_actor_kernel(%arg0: i32, %arg1: memref<32x2304xi8, #tpu.memory_space<vmem>>, %arg2: memref<768x32xbf16, #tpu.memory_space<vmem>>, %arg3: memref<1x32xf32, #tpu.memory_space<vmem>>, %arg4: memref<160x32xbf16, #tpu.memory_space<vmem>>, %arg5: memref<1x32xf32, #tpu.memory_space<vmem>>, %arg6: memref<1x32xf32, #tpu.memory_space<vmem>>, %arg7: memref<1x32xf32, #tpu.memory_space<vmem>>, %arg8: memref<32x32xbf16, #tpu.memory_space<vmem>>, %arg9: memref<1x32xf32, #tpu.memory_space<vmem>>, %arg10: memref<32x32xbf16, #tpu.memory_space<vmem>>, %arg11: memref<1x32xf32, #tpu.memory_space<vmem>>, %arg12: memref<32x8xbf16, #tpu.memory_space<vmem>>, %arg13: memref<1x8xf32, #tpu.memory_space<vmem>>, %arg14: memref<32x4xf32, #tpu.memory_space<vmem>>, %arg15: memref<32x256xf32, #tpu.memory_space<vmem>>, %arg16: memref<32x128xf32, #tpu.memory_space<vmem>>) attributes {dimension_semantics = [#tpu.dimension_semantics<parallel>], iteration_bounds = array<i64: 1>, scalar_prefetch = 0 : i64, scratch_operands = 0 : i64, tpu.core_type = #tpu.core_type<tc>, window_params = [{transform_indices = @transform_0, window_bounds = array<i64: 32, 2304>}, {pipeline_mode = #tpu.pipeline_mode<synchronous>, transform_indices = @transform_1, window_bounds = array<i64: 768, 32>}, {pipeline_mode = #tpu.pipeline_mode<synchronous>, transform_indices = @transform_2, window_bounds = array<i64: 1, 32>}, {pipeline_mode = #tpu.pipeline_mode<synchronous>, transform_indices = @transform_3, window_bounds = array<i64: 160, 32>}, {pipeline_mode = #tpu.pipeline_mode<synchronous>, transform_indices = @transform_4, window_bounds = array<i64: 1, 32>}, {pipeline_mode = #tpu.pipeline_mode<synchronous>, transform_indices = @transform_5, window_bounds = array<i64: 1, 32>}, {pipeline_mode = #tpu.pipeline_mode<synchronous>, transform_indices = @transform_6, window_bounds = array<i64: 1, 32>}, {pipeline_mode = #tpu.pipeline_mode<synchronous>, transform_indices = @transform_7, window_bounds = array<i64: 32, 32>}, {pipeline_mode = #tpu.pipeline_mode<synchronous>, transform_indices = @transform_8, window_bounds = array<i64: 1, 32>}, {pipeline_mode = #tpu.pipeline_mode<synchronous>, transform_indices = @transform_9, window_bounds = array<i64: 32, 32>}, {pipeline_mode = #tpu.pipeline_mode<synchronous>, transform_indices = @transform_10, window_bounds = array<i64: 1, 32>}, {pipeline_mode = #tpu.pipeline_mode<synchronous>, transform_indices = @transform_11, window_bounds = array<i64: 32, 8>}, {pipeline_mode = #tpu.pipeline_mode<synchronous>, transform_indices = @transform_12, window_bounds = array<i64: 1, 8>}, {transform_indices = @transform_13, window_bounds = array<i64: 32, 4>}, {transform_indices = @transform_14, window_bounds = array<i64: 32, 256>}, {transform_indices = @transform_15, window_bounds = array<i64: 32, 128>}]} {
    %c0 = arith.constant 0 : index
    %c0_0 = arith.constant 0 : index
    %0 = vector.load %arg2[%c0, %c0_0] : memref<768x32xbf16, #tpu.memory_space<vmem>>, vector<768x32xbf16>
    %c0_1 = arith.constant 0 : index
    %c0_2 = arith.constant 0 : index
    %1 = vector.load %arg3[%c0_1, %c0_2] : memref<1x32xf32, #tpu.memory_space<vmem>>, vector<1x32xf32>
    %c0_3 = arith.constant 0 : index
    %c0_4 = arith.constant 0 : index
    %2 = vector.load %arg1[%c0_3, %c0_4] : memref<32x2304xi8, #tpu.memory_space<vmem>>, vector<32x768xi8>
    %3 = arith.extui %2 : vector<32x768xi8> to vector<32x768xi32>
    %4 = arith.sitofp %3 : vector<32x768xi32> to vector<32x768xf32>
    %5 = arith.truncf %4 : vector<32x768xf32> to vector<32x768xbf16>
    %cst = arith.constant dense<0.000000e+00> : vector<32x32xf32>
    %6 = tpu.matmul %5, %0, %cst {dimension_numbers = #tpu.dot_dimension_numbers<[1], [0], [0], [1], [0, 0, 1, 1], [], []>} : vector<32x768xbf16>, vector<768x32xbf16>, vector<32x32xf32> -> vector<32x32xf32>
    %7 = vector.broadcast %1 : vector<1x32xf32> to vector<32x32xf32>
    %8 = arith.addf %6, %7 : vector<32x32xf32>
    %c0_5 = arith.constant 0 : index
    %c768 = arith.constant 768 : index
    %9 = vector.load %arg1[%c0_5, %c768] : memref<32x2304xi8, #tpu.memory_space<vmem>>, vector<32x768xi8>
    %10 = arith.extui %9 : vector<32x768xi8> to vector<32x768xi32>
    %11 = arith.sitofp %10 : vector<32x768xi32> to vector<32x768xf32>
    %12 = arith.truncf %11 : vector<32x768xf32> to vector<32x768xbf16>
    %cst_6 = arith.constant dense<0.000000e+00> : vector<32x32xf32>
    %13 = tpu.matmul %12, %0, %cst_6 {dimension_numbers = #tpu.dot_dimension_numbers<[1], [0], [0], [1], [0, 0, 1, 1], [], []>} : vector<32x768xbf16>, vector<768x32xbf16>, vector<32x32xf32> -> vector<32x32xf32>
    %14 = vector.broadcast %1 : vector<1x32xf32> to vector<32x32xf32>
    %15 = arith.addf %13, %14 : vector<32x32xf32>
    %c0_7 = arith.constant 0 : index
    %c1536 = arith.constant 1536 : index
    %16 = vector.load %arg1[%c0_7, %c1536] : memref<32x2304xi8, #tpu.memory_space<vmem>>, vector<32x768xi8>
    %17 = arith.extui %16 : vector<32x768xi8> to vector<32x768xi32>
    %18 = arith.sitofp %17 : vector<32x768xi32> to vector<32x768xf32>
    %19 = arith.truncf %18 : vector<32x768xf32> to vector<32x768xbf16>
    %cst_8 = arith.constant dense<0.000000e+00> : vector<32x32xf32>
    %20 = tpu.matmul %19, %0, %cst_8 {dimension_numbers = #tpu.dot_dimension_numbers<[1], [0], [0], [1], [0, 0, 1, 1], [], []>} : vector<32x768xbf16>, vector<768x32xbf16>, vector<32x32xf32> -> vector<32x32xf32>
    %21 = vector.broadcast %1 : vector<1x32xf32> to vector<32x32xf32>
    %22 = arith.addf %20, %21 : vector<32x32xf32>
    %23 = arith.subf %15, %8 : vector<32x32xf32>
    %24 = arith.subf %22, %15 : vector<32x32xf32>
    %25 = tpu.concatenate %8, %15, %22, %23, %24 in 1 : vector<32x32xf32>, vector<32x32xf32>, vector<32x32xf32>, vector<32x32xf32>, vector<32x32xf32> -> vector<32x160xf32>
    %c0_9 = arith.constant 0 : index
    %c0_10 = arith.constant 0 : index
    %26 = vector.load %arg4[%c0_9, %c0_10] : memref<160x32xbf16, #tpu.memory_space<vmem>>, vector<160x32xbf16>
    %c0_11 = arith.constant 0 : index
    %c0_12 = arith.constant 0 : index
    %27 = vector.load %arg5[%c0_11, %c0_12] : memref<1x32xf32, #tpu.memory_space<vmem>>, vector<1x32xf32>
    %c0_13 = arith.constant 0 : index
    %c0_14 = arith.constant 0 : index
    %28 = vector.load %arg6[%c0_13, %c0_14] : memref<1x32xf32, #tpu.memory_space<vmem>>, vector<1x32xf32>
    %c0_15 = arith.constant 0 : index
    %c0_16 = arith.constant 0 : index
    %29 = vector.load %arg7[%c0_15, %c0_16] : memref<1x32xf32, #tpu.memory_space<vmem>>, vector<1x32xf32>
    %c0_17 = arith.constant 0 : index
    %c0_18 = arith.constant 0 : index
    %30 = vector.load %arg8[%c0_17, %c0_18] : memref<32x32xbf16, #tpu.memory_space<vmem>>, vector<32x32xbf16>
    %c0_19 = arith.constant 0 : index
    %c0_20 = arith.constant 0 : index
    %31 = vector.load %arg9[%c0_19, %c0_20] : memref<1x32xf32, #tpu.memory_space<vmem>>, vector<1x32xf32>
    %c0_21 = arith.constant 0 : index
    %c0_22 = arith.constant 0 : index
    %32 = vector.load %arg10[%c0_21, %c0_22] : memref<32x32xbf16, #tpu.memory_space<vmem>>, vector<32x32xbf16>
    %c0_23 = arith.constant 0 : index
    %c0_24 = arith.constant 0 : index
    %33 = vector.load %arg11[%c0_23, %c0_24] : memref<1x32xf32, #tpu.memory_space<vmem>>, vector<1x32xf32>
    %c0_25 = arith.constant 0 : index
    %c0_26 = arith.constant 0 : index
    %34 = vector.load %arg12[%c0_25, %c0_26] : memref<32x8xbf16, #tpu.memory_space<vmem>>, vector<32x8xbf16>
    %c0_27 = arith.constant 0 : index
    %c0_28 = arith.constant 0 : index
    %35 = vector.load %arg13[%c0_27, %c0_28] : memref<1x8xf32, #tpu.memory_space<vmem>>, vector<1x8xf32>
    %c0_29 = arith.constant 0 : index
    %c0_30 = arith.constant 0 : index
    %36 = vector.load %arg14[%c0_29, %c0_30] : memref<32x4xf32, #tpu.memory_space<vmem>>, vector<32x4xf32>
    %37 = arith.truncf %25 : vector<32x160xf32> to vector<32x160xbf16>
    %cst_31 = arith.constant dense<0.000000e+00> : vector<32x32xf32>
    %38 = tpu.matmul %37, %26, %cst_31 {dimension_numbers = #tpu.dot_dimension_numbers<[1], [0], [0], [1], [0, 0, 1, 1], [], []>} : vector<32x160xbf16>, vector<160x32xbf16>, vector<32x32xf32> -> vector<32x32xf32>
    %39 = vector.broadcast %27 : vector<1x32xf32> to vector<32x32xf32>
    %40 = arith.addf %38, %39 : vector<32x32xf32>
    %cst_32 = arith.constant dense<0.000000e+00> : vector<32xf32>
    %41 = vector.multi_reduction <add>, %40, %cst_32 [1] : vector<32x32xf32> to vector<32xf32>
    %42 = vector.shape_cast %41 : vector<32xf32> to vector<32x1xf32>
    %cst_33 = arith.constant 3.200000e+01 : f32
    %43 = vector.broadcast %cst_33 : f32 to vector<32x1xf32>
    %44 = arith.divf %42, %43 : vector<32x1xf32>
    %45 = vector.broadcast %44 : vector<32x1xf32> to vector<32x32xf32>
    %46 = arith.subf %40, %45 : vector<32x32xf32>
    %47 = arith.mulf %46, %46 : vector<32x32xf32>
    %cst_34 = arith.constant dense<0.000000e+00> : vector<32xf32>
    %48 = vector.multi_reduction <add>, %47, %cst_34 [1] : vector<32x32xf32> to vector<32xf32>
    %49 = vector.shape_cast %48 : vector<32xf32> to vector<32x1xf32>
    %cst_35 = arith.constant 3.200000e+01 : f32
    %50 = vector.broadcast %cst_35 : f32 to vector<32x1xf32>
    %51 = arith.divf %49, %50 : vector<32x1xf32>
    %52 = vector.broadcast %44 : vector<32x1xf32> to vector<32x32xf32>
    %53 = arith.subf %40, %52 : vector<32x32xf32>
    %cst_36 = arith.constant 9.99999974E-6 : f32
    %54 = vector.broadcast %cst_36 : f32 to vector<32x1xf32>
    %55 = arith.addf %51, %54 : vector<32x1xf32>
    %56 = math.rsqrt %55 : vector<32x1xf32>
    %57 = vector.broadcast %56 : vector<32x1xf32> to vector<32x32xf32>
    %58 = arith.mulf %53, %57 : vector<32x32xf32>
    %59 = vector.broadcast %28 : vector<1x32xf32> to vector<32x32xf32>
    %60 = arith.mulf %58, %59 : vector<32x32xf32>
    %61 = vector.broadcast %29 : vector<1x32xf32> to vector<32x32xf32>
    %62 = arith.addf %60, %61 : vector<32x32xf32>
    %63 = arith.truncf %62 : vector<32x32xf32> to vector<32x32xbf16>
    %cst_37 = arith.constant dense<0.000000e+00> : vector<32x32xf32>
    %64 = tpu.matmul %63, %30, %cst_37 {dimension_numbers = #tpu.dot_dimension_numbers<[1], [0], [0], [1], [0, 0, 1, 1], [], []>} : vector<32x32xbf16>, vector<32x32xbf16>, vector<32x32xf32> -> vector<32x32xf32>
    %65 = vector.broadcast %31 : vector<1x32xf32> to vector<32x32xf32>
    %66 = arith.addf %64, %65 : vector<32x32xf32>
    %cst_38 = arith.constant 0.000000e+00 : f32
    %67 = vector.broadcast %cst_38 : f32 to vector<32x32xf32>
    %68 = arith.maximumf %66, %67 : vector<32x32xf32>
    %69 = arith.truncf %68 : vector<32x32xf32> to vector<32x32xbf16>
    %cst_39 = arith.constant dense<0.000000e+00> : vector<32x32xf32>
    %70 = tpu.matmul %69, %32, %cst_39 {dimension_numbers = #tpu.dot_dimension_numbers<[1], [0], [0], [1], [0, 0, 1, 1], [], []>} : vector<32x32xbf16>, vector<32x32xbf16>, vector<32x32xf32> -> vector<32x32xf32>
    %71 = vector.broadcast %33 : vector<1x32xf32> to vector<32x32xf32>
    %72 = arith.addf %70, %71 : vector<32x32xf32>
    %cst_40 = arith.constant 0.000000e+00 : f32
    %73 = vector.broadcast %cst_40 : f32 to vector<32x32xf32>
    %74 = arith.maximumf %72, %73 : vector<32x32xf32>
    %75 = arith.truncf %74 : vector<32x32xf32> to vector<32x32xbf16>
    %cst_41 = arith.constant dense<0.000000e+00> : vector<32x8xf32>
    %76 = tpu.matmul %75, %34, %cst_41 {dimension_numbers = #tpu.dot_dimension_numbers<[1], [0], [0], [1], [0, 0, 1, 1], [], []>} : vector<32x32xbf16>, vector<32x8xbf16>, vector<32x8xf32> -> vector<32x8xf32>
    %77 = vector.broadcast %35 : vector<1x8xf32> to vector<32x8xf32>
    %78 = arith.addf %76, %77 : vector<32x8xf32>
    %79 = vector.extract_strided_slice %78 {offsets = [0, 0], sizes = [32, 4], strides = [1, 1]} : vector<32x8xf32> to vector<32x4xf32>
    %80 = vector.extract_strided_slice %78 {offsets = [0, 4], sizes = [32, 4], strides = [1, 1]} : vector<32x8xf32> to vector<32x4xf32>
    %81 = math.tanh %80 : vector<32x4xf32>
    %cst_42 = arith.constant 1.000000e+00 : f32
    %82 = vector.broadcast %cst_42 : f32 to vector<32x4xf32>
    %83 = arith.addf %81, %82 : vector<32x4xf32>
    %cst_43 = arith.constant 6.000000e+00 : f32
    %84 = vector.broadcast %cst_43 : f32 to vector<32x4xf32>
    %85 = arith.mulf %84, %83 : vector<32x4xf32>
    %cst_44 = arith.constant -1.000000e+01 : f32
    %86 = vector.broadcast %cst_44 : f32 to vector<32x4xf32>
    %87 = arith.addf %86, %85 : vector<32x4xf32>
    %88 = math.exp %87 : vector<32x4xf32>
    %89 = arith.mulf %36, %88 : vector<32x4xf32>
    %90 = arith.addf %89, %79 : vector<32x4xf32>
    %cst_45 = arith.constant -5.000000e-01 : f32
    %91 = vector.broadcast %cst_45 : f32 to vector<32x4xf32>
    %92 = arith.mulf %91, %36 : vector<32x4xf32>
    %93 = arith.mulf %92, %36 : vector<32x4xf32>
    %94 = arith.subf %93, %87 : vector<32x4xf32>
    %cst_46 = arith.constant dense<0.000000e+00> : vector<32xf32>
    %95 = vector.multi_reduction <add>, %94, %cst_46 [1] : vector<32x4xf32> to vector<32xf32>
    %96 = vector.shape_cast %95 : vector<32xf32> to vector<32x1xf32>
    %cst_47 = arith.constant 3.67575407 : f32
    %97 = vector.broadcast %cst_47 : f32 to vector<32x1xf32>
    %98 = arith.subf %96, %97 : vector<32x1xf32>
    %99 = math.tanh %79 : vector<32x4xf32>
    %100 = math.tanh %90 : vector<32x4xf32>
    %101 = arith.mulf %100, %100 : vector<32x4xf32>
    %cst_48 = arith.constant 1.000000e+00 : f32
    %102 = vector.broadcast %cst_48 : f32 to vector<32x4xf32>
    %103 = arith.subf %102, %101 : vector<32x4xf32>
    %cst_49 = arith.constant 0.000000e+00 : f32
    %104 = vector.broadcast %cst_49 : f32 to vector<32x4xf32>
    %105 = arith.maximumf %103, %104 : vector<32x4xf32>
    %cst_50 = arith.constant 9.99999997E-7 : f32
    %106 = vector.broadcast %cst_50 : f32 to vector<32x4xf32>
    %107 = arith.addf %105, %106 : vector<32x4xf32>
    %108 = math.log %107 : vector<32x4xf32>
    %cst_51 = arith.constant dense<0.000000e+00> : vector<32xf32>
    %109 = vector.multi_reduction <add>, %108, %cst_51 [1] : vector<32x4xf32> to vector<32xf32>
    %110 = vector.shape_cast %109 : vector<32xf32> to vector<32x1xf32>
    %111 = arith.subf %98, %110 : vector<32x1xf32>
    %cst_52 = arith.constant 0.000000e+00 : f32
    %112 = vector.broadcast %cst_52 : f32 to vector<32x96xf32>
    %113 = tpu.concatenate %25, %112 in 1 : vector<32x160xf32>, vector<32x96xf32> -> vector<32x256xf32>
    %c0_53 = arith.constant 0 : index
    %c0_54 = arith.constant 0 : index
    %114 = vector.load %arg15[%c0_53, %c0_54] : memref<32x256xf32, #tpu.memory_space<vmem>>, vector<32x256xf32>
    tpu.vector_store %arg15[%c0_53, %c0_54], %113 {strides = array<i32>} : memref<32x256xf32, #tpu.memory_space<vmem>>, vector<32x256xf32>,
    %cst_55 = arith.constant 0.000000e+00 : f32
    %115 = vector.broadcast %cst_55 : f32 to vector<32x115xf32>
    %116 = tpu.concatenate %99, %87, %100, %111, %115 in 1 : vector<32x4xf32>, vector<32x4xf32>, vector<32x4xf32>, vector<32x1xf32>, vector<32x115xf32> -> vector<32x128xf32>
    %c0_56 = arith.constant 0 : index
    %c0_57 = arith.constant 0 : index
    %117 = vector.load %arg16[%c0_56, %c0_57] : memref<32x128xf32, #tpu.memory_space<vmem>>, vector<32x128xf32>
    tpu.vector_store %arg16[%c0_56, %c0_57], %116 {strides = array<i32>} : memref<32x128xf32, #tpu.memory_space<vmem>>, vector<32x128xf32>,
    return
  }
  func.func @transform_0(%arg0: i32) -> (i32, i32) {
    %c0_i32 = arith.constant 0 : i32
    %c0_i32_0 = arith.constant 0 : i32
    return %arg0, %c0_i32 : i32, i32
  }
  func.func @transform_1(%arg0: i32) -> (i32, i32) {
    %c0_i32 = arith.constant 0 : i32
    %c0_i32_0 = arith.constant 0 : i32
    %c0_i32_1 = arith.constant 0 : i32
    return %c0_i32, %c0_i32_0 : i32, i32
  }
  func.func @transform_2(%arg0: i32) -> (i32, i32) {
    %c0_i32 = arith.constant 0 : i32
    %c0_i32_0 = arith.constant 0 : i32
    %c0_i32_1 = arith.constant 0 : i32
    return %c0_i32, %c0_i32_0 : i32, i32
  }
  func.func @transform_3(%arg0: i32) -> (i32, i32) {
    %c0_i32 = arith.constant 0 : i32
    %c0_i32_0 = arith.constant 0 : i32
    %c0_i32_1 = arith.constant 0 : i32
    return %c0_i32, %c0_i32_0 : i32, i32
  }
  func.func @transform_4(%arg0: i32) -> (i32, i32) {
    %c0_i32 = arith.constant 0 : i32
    %c0_i32_0 = arith.constant 0 : i32
    %c0_i32_1 = arith.constant 0 : i32
    return %c0_i32, %c0_i32_0 : i32, i32
  }
  func.func @transform_5(%arg0: i32) -> (i32, i32) {
    %c0_i32 = arith.constant 0 : i32
    %c0_i32_0 = arith.constant 0 : i32
    %c0_i32_1 = arith.constant 0 : i32
    return %c0_i32, %c0_i32_0 : i32, i32
  }
  func.func @transform_6(%arg0: i32) -> (i32, i32) {
    %c0_i32 = arith.constant 0 : i32
    %c0_i32_0 = arith.constant 0 : i32
    %c0_i32_1 = arith.constant 0 : i32
    return %c0_i32, %c0_i32_0 : i32, i32
  }
  func.func @transform_7(%arg0: i32) -> (i32, i32) {
    %c0_i32 = arith.constant 0 : i32
    %c0_i32_0 = arith.constant 0 : i32
    %c0_i32_1 = arith.constant 0 : i32
    return %c0_i32, %c0_i32_0 : i32, i32
  }
  func.func @transform_8(%arg0: i32) -> (i32, i32) {
    %c0_i32 = arith.constant 0 : i32
    %c0_i32_0 = arith.constant 0 : i32
    %c0_i32_1 = arith.constant 0 : i32
    return %c0_i32, %c0_i32_0 : i32, i32
  }
  func.func @transform_9(%arg0: i32) -> (i32, i32) {
    %c0_i32 = arith.constant 0 : i32
    %c0_i32_0 = arith.constant 0 : i32
    %c0_i32_1 = arith.constant 0 : i32
    return %c0_i32, %c0_i32_0 : i32, i32
  }
  func.func @transform_10(%arg0: i32) -> (i32, i32) {
    %c0_i32 = arith.constant 0 : i32
    %c0_i32_0 = arith.constant 0 : i32
    %c0_i32_1 = arith.constant 0 : i32
    return %c0_i32, %c0_i32_0 : i32, i32
  }
  func.func @transform_11(%arg0: i32) -> (i32, i32) {
    %c0_i32 = arith.constant 0 : i32
    %c0_i32_0 = arith.constant 0 : i32
    %c0_i32_1 = arith.constant 0 : i32
    return %c0_i32, %c0_i32_0 : i32, i32
  }
  func.func @transform_12(%arg0: i32) -> (i32, i32) {
    %c0_i32 = arith.constant 0 : i32
    %c0_i32_0 = arith.constant 0 : i32
    %c0_i32_1 = arith.constant 0 : i32
    return %c0_i32, %c0_i32_0 : i32, i32
  }
  func.func @transform_13(%arg0: i32) -> (i32, i32) {
    %c0_i32 = arith.constant 0 : i32
    %c0_i32_0 = arith.constant 0 : i32
    return %arg0, %c0_i32 : i32, i32
  }
  func.func @transform_14(%arg0: i32) -> (i32, i32) {
    %c0_i32 = arith.constant 0 : i32
    %c0_i32_0 = arith.constant 0 : i32
    return %arg0, %c0_i32 : i32, i32
  }
  func.func @transform_15(%arg0: i32) -> (i32, i32) {
    %c0_i32 = arith.constant 0 : i32
    %c0_i32_0 = arith.constant 0 : i32
    return %arg0, %c0_i32 : i32, i32
  }
}

</mosaic_0001>

<bundles_post_ra>
// kernel: tpu_custom_call.1
= control target key start
LH: loop header
LB: loop body
LE: loop exit
PB: predicated region body
PF: predicated region fallthrough
CT: control target
= control target key end

     0   :  { %21 = vsyncpa [#allocation3], 0  ;;  %s2993_s0 = inlined_call_operand.vmem [shape: u8[32,2304], index: 0, kind: input, shape index: {}]   ;;  %s2994_s1 = inlined_call_operand.vmem [shape: bf16[768,32], index: 1, kind: input, shape index: {}]   ;;  %s2995_s2 = inlined_call_operand.vmem [shape: f32[1,32], index: 2, kind: input, shape index: {}]   ;;  %s2996_s3 = inlined_call_operand.vmem [shape: bf16[160,32], index: 3, kind: input, shape index: {}]   ;;  %s2997_s4 = inlined_call_operand.vmem [shape: f32[1,32], index: 4, kind: input, shape index: {}]   ;;  %s2998_s5 = inlined_call_operand.vmem [shape: f32[1,32], index: 5, kind: input, shape index: {}]   ;;  %s2999_s6 = inlined_call_operand.vmem [shape: f32[1,32], index: 6, kind: input, shape index: {}]   ;;  %s3000_s7 = inlined_call_operand.vmem [shape: bf16[32,32], index: 7, kind: input, shape index: {}]   ;;  %s3001_s8 = inlined_call_operand.vmem [shape: f32[1,32], index: 8, kind: input, shape index: {}]   ;;  %s3002_s9 = inlined_call_operand.vmem [shape: bf16[32,32], index: 9, kind: input, shape index: {}]   ;;  %s3003_s10 = inlined_call_operand.vmem [shape: f32[1,32], index: 10, kind: input, shape index: {}]   ;;  %s3004_s11 = inlined_call_operand.vmem [shape: bf16[32,8], index: 11, kind: input, shape index: {}]   ;;  %s3005_s12 = inlined_call_operand.vmem [shape: f32[1,8], index: 12, kind: input, shape index: {}]   ;;  %s3006_s13 = inlined_call_operand.vmem [shape: f32[32,4], index: 13, kind: input, shape index: {}]   ;;  %s3007_s14 = inlined_call_operand.hbm [shape: f32[32,256], index: 14, kind: output, shape index: {0}]   ;;  %s3008_s15 = inlined_call_operand.hbm [shape: f32[32,128], index: 15, kind: output, shape index: {1}]  }
   0x1   :  { %v2326_v0 = vld [vmem:[%s2994_s1 + $0x78] sm:$0xff]   ;;  %v2349_v4 = vld [vmem:[%s2994_s1 + $0x70] sm:$0xff]   ;;  %v2373_v8 = vld [vmem:[%s2994_s1 + $0x68] sm:$0xff]  }
   0x2   :  { %v2331_v1 = vld [vmem:[%s2994_s1 + $0x38] sm:$0xff]   ;;  %1785 = vmatprep.subr.bf16.mxu0 %v2326_v0  ;;  %v2355_v5 = vld [vmem:[%s2994_s1 + $0x30] sm:$0xff]   ;;  %v2379_v9 = vld [vmem:[%s2994_s1 + $0x28] sm:$0xff]  }
   0x3   :  { %v2337_v2 = vld [vmem:[%s2994_s1 + $0xf8] sm:$0xff]   ;;  %1786 = vmatpush3.bf16.msra.mxu0 %v2331_v1  ;;  %v2361_v6 = vld [vmem:[%s2994_s1 + $0xf0] sm:$0xff]   ;;  %v2385_v10 = vld [vmem:[%s2994_s1 + $0xe8] sm:$0xff]  }
   0x4   :  { %v2343_v3 = vld [vmem:[%s2994_s1 + $0xb8] sm:$0xff]   ;;  %1813 = vmatprep.subr.bf16.mxu1 %v2337_v2  ;;  %1787 = vmatprep.subr.bf16.mxu0 %v2349_v4  ;;  %v2367_v7 = vld [vmem:[%s2994_s1 + $0xb0] sm:$0xff]   ;;  %v2391_v11 = vld [vmem:[%s2994_s1 + $0xa8] sm:$0xff]  }
   0x5   :  { %1814 = vmatpush3.bf16.msra.mxu1 %v2343_v3  ;;  %v2397_v12 = vld [vmem:[%s2994_s1 + $0x60] sm:$0xff]   ;;  %v2421_v16 = vld [vmem:[%s2994_s1 + $0x58] sm:$0xff]   ;;  %v2445_v20 = vld [vmem:[%s2994_s1 + $0x50] sm:$0xff]  }
   0x6   :  { %1815 = vmatprep.subr.bf16.mxu1 %v2361_v6  ;;  %v2403_v13 = vld [vmem:[%s2994_s1 + $0x20] sm:$0xff]   ;;  %v2427_v17 = vld [vmem:[%s2994_s1 + $0x18] sm:$0xff]   ;;  %v2451_v21 = vld [vmem:[%s2994_s1 + $0x10] sm:$0xff]  }
   0x7   :  { %1788 = vmatpush3.bf16.msra.mxu0 %v2355_v5  ;;  %v2409_v14 = vld [vmem:[%s2994_s1 + $0xe0] sm:$0xff]   ;;  %v2433_v18 = vld [vmem:[%s2994_s1 + $0xd8] sm:$0xff]   ;;  %v2457_v22 = vld [vmem:[%s2994_s1 + $0xd0] sm:$0xff]  }
   0x8   :  { %1789 = vmatprep.subr.bf16.mxu0 %v2373_v8  ;;  %v2415_v15 = vld [vmem:[%s2994_s1 + $0xa0] sm:$0xff]   ;;  %v2439_v19 = vld [vmem:[%s2994_s1 + $0x98] sm:$0xff]   ;;  %v2463_v23 = vld [vmem:[%s2994_s1 + $0x90] sm:$0xff]  }
   0x9   :  { %1816 = vmatpush3.bf16.msra.mxu1 %v2367_v7  ;;  %v2469_v24 = vld [vmem:[%s2994_s1 + $0x48] sm:$0xff]   ;;  %v2493_v28 = vld [vmem:[%s2994_s1 + $0x40] sm:$0xff]   ;;  %v2523_v37 = vld [vmem:[%s2994_s1 + $0x178] sm:$0xff]  }
   0xa   :  { %1817 = vmatprep.subr.bf16.mxu1 %v2385_v10  ;;  %v2475_v25 = vld [vmem:[%s2994_s1 + $0x8] sm:$0xff]   ;;  %v2499_v29 = vld [vmem:[%s2994_s1] sm:$0xff]   ;;  %v152_v38 = vld [vmem:[%s2993_s0 + $0x18] sm:$0xff] }
   0xb   :  { %1790 = vmatpush3.bf16.msra.mxu0 %v2379_v9  ;;  %v2481_v26 = vld [vmem:[%s2994_s1 + $0xc8] sm:$0xff]   ;;  %v2505_v30 = vld [vmem:[%s2994_s1 + $0xc0] sm:$0xff]   ;;  %v158_v39 = vunpack.c.l.u8.bf16 %v152_v38  ;;  %v2532_v40 = vld [vmem:[%s2994_s1 + $0x138] sm:$0xff]   ;;  %v164_v41 = vunpack.c.h.u8.bf16 %v152_v38 }
   0xc   :  { %1791 = vmatprep.subr.bf16.mxu0 %v2397_v12  ;;  %v2487_v27 = vld [vmem:[%s2994_s1 + $0x88] sm:$0xff]   ;;  %v2515_v33 = vld [vmem:[%s2994_s1 + $0x80] sm:$0xff]   ;;  %v151_v42 = vld [vmem:[%s2993_s0 + $0x10] sm:$0xff] }
   0xd   :  { %1818 = vmatpush3.bf16.msra.mxu1 %v2391_v11  ;;  %v150_v31 = vld [vmem:[%s2993_s0 + $0x8] sm:$0xff]  ;;  %v149_v34 = vld [vmem:[%s2993_s0] sm:$0xff]  ;;  %542 = vmatprep.mubr.bf16.mxu1 %v158_v39  ;;  %v157_v43 = vunpack.c.l.u8.bf16 %v151_v42  ;;  %v2542_v44 = vld [vmem:[%s2994_s1 + $0x170] sm:$0xff]   ;;  %v163_v50 = vunpack.c.h.u8.bf16 %v151_v42 }
   0xe   :  { %1819 = vmatprep.subr.bf16.mxu1 %v2409_v14  ;;  %v156_v32 = vunpack.c.l.u8.bf16 %v150_v31  ;;  %v162_v35 = vunpack.c.h.u8.bf16 %v150_v31  ;;  %v155_v36 = vunpack.c.l.u8.bf16 %v149_v34  ;;  %v2548_v45 = vld [vmem:[%s2994_s1 + $0x130] sm:$0xff]   ;;  %v2554_v46 = vld [vmem:[%s2994_s1 + $0x168] sm:$0xff]   ;;  %v161_v47 = vunpack.c.h.u8.bf16 %v149_v34  ;;  %v2568_v49 = vld [vmem:[%s2994_s1 + $0x160] sm:$0xff]  }
   0xf   :  { %1792 = vmatpush3.bf16.msra.mxu0 %v2403_v13  ;;  %v2562_v48 = vld [vmem:[%s2994_s1 + $0x128] sm:$0xff]   ;;  %v2576_v51 = vld [vmem:[%s2994_s1 + $0x120] sm:$0xff]   ;;  %v2582_v52 = vld [vmem:[%s2994_s1 + $0x158] sm:$0xff]  }
  0x10   :  { %1793 = vmatprep.subr.bf16.mxu0 %v2421_v16  ;;  %493 = vmatprep.mubr.bf16.mxu0 %v156_v32  ;;  %v2590_v53 = vld [vmem:[%s2994_s1 + $0x118] sm:$0xff]   ;;  %v2596_v54 = vld [vmem:[%s2994_s1 + $0x150] sm:$0xff]   ;;  %v154_v55 = vld [vmem:[%s2993_s0 + $0x28] sm:$0xff] }
  0x11   :  { %1820 = vmatpush3.bf16.msra.mxu1 %v2415_v15  ;;  %v160_v56 = vunpack.c.l.u8.bf16 %v154_v55  ;;  %v609_v57 = vld [vmem:[%s2993_s0 + $0x38] sm:$0xff]  ;;  %v2610_v59 = vld [vmem:[%s2994_s1 + $0x110] sm:$0xff]   ;;  %v2616_v60 = vld [vmem:[%s2994_s1 + $0x148] sm:$0xff]  }
  0x12   :  { %1821 = vmatprep.subr.bf16.mxu1 %v2433_v18  ;;  %v615_v58 = vunpack.c.l.u8.bf16 %v609_v57  ;;  %v2621_v61 = vld [vmem:[%s2994_s1 + $0x108] sm:$0xff]   ;;  %v2627_v62 = vld [vmem:[%s2994_s1 + $0x140] sm:$0xff]   ;;  %v608_v32 = vld [vmem:[%s2993_s0 + $0x30] sm:$0xff] }
  0x13   :  { %1794 = vmatpush3.bf16.msra.mxu0 %v2427_v17  ;;  %v2635_v63 = vld [vmem:[%s2994_s1 + $0x100] sm:$0xff]  }
  0x14   :  { %1795 = vmatprep.subr.bf16.mxu0 %v2445_v20  ;;  %v153_v31 = vld [vmem:[%s2993_s0 + $0x20] sm:$0xff] }
  0x15   :  { %1822 = vmatpush3.bf16.msra.mxu1 %v2439_v19  ;;  %v159_v34 = vunpack.c.l.u8.bf16 %v153_v31 }
  0x16   :  { %1823 = vmatprep.subr.bf16.mxu1 %v2457_v22 }
  0x17   :  { %1796 = vmatpush3.bf16.msra.mxu0 %v2451_v21 }
  0x18   :  { %1797 = vmatprep.subr.bf16.mxu0 %v2469_v24 }
  0x19   :  { %1824 = vmatpush3.bf16.msra.mxu1 %v2463_v23 }
  0x1a   :  { %1825 = vmatprep.subr.bf16.mxu1 %v2481_v26 }
  0x1b   :  { %1798 = vmatpush3.bf16.msra.mxu0 %v2475_v25 }
  0x1c   :  { %1799 = vmatprep.subr.bf16.mxu0 %v2493_v28 }
  0x1d   :  { %1826 = vmatpush3.bf16.msra.mxu1 %v2487_v27 }
  0x1e   :  { %1827 = vmatprep.subr.bf16.mxu1 %v2505_v30 }
  0x1f   :  { %1800 = vmatpush3.bf16.msra.mxu0 %v2499_v29 }
  0x20   :  { %1841 = vmatprep.subr.bf16.mxu0 %v2523_v37 }
  0x21   :  { %1828 = vmatpush3.bf16.msra.mxu1 %v2515_v33 }
  0x22   :  { %494 = vmatmul.mubr.bf16.vlgmr.msra.gmra.mxu0 %v155_v36  ;;  %1869 = vmatprep.subr.bf16.mxu1 %v2326_v0 }
  0x23   :  { %1842 = vmatpush3.bf16.msra.mxu0 %v2532_v40  ;;  %501 = vmatprep.mubr.bf16.mxu0 %v162_v35 }
  0x24   :  { %543 = vmatmul.mubr.bf16.vlgmr.msra.gmra.mxu1 %v157_v43  ;;  %1843 = vmatprep.subr.bf16.mxu0 %v2542_v44 }
  0x25   :  { %1870 = vmatpush3.bf16.msra.mxu1 %v2331_v1  ;;  %550 = vmatprep.mubr.bf16.mxu1 %v164_v41 }
  0x26   :  { %1871 = vmatprep.subr.bf16.mxu1 %v2349_v4 }
  0x27   :  { %1844 = vmatpush3.bf16.msra.mxu0 %v2548_v45 }
  0x28   :  { %1845 = vmatprep.subr.bf16.mxu0 %v2554_v46 }
  0x29   :  { %1872 = vmatpush3.bf16.msra.mxu1 %v2355_v5 }
  0x2a   :  { %502 = vmatmul.mubr.bf16.gmra.mxu0 %v161_v47  ;;  %1873 = vmatprep.subr.bf16.mxu1 %v2373_v8 }
  0x2b   :  { %1846 = vmatpush3.bf16.msra.mxu0 %v2562_v48  ;;  %591 = vmatprep.mubr.bf16.mxu0 %v160_v56 }
  0x2c   :  { %1847 = vmatprep.subr.bf16.mxu0 %v2568_v49  ;;  %551 = vmatmul.mubr.bf16.gmra.mxu1 %v163_v50 }
  0x2d   :  { %1874 = vmatpush3.bf16.msra.mxu1 %v2379_v9  ;;  %658 = vmatprep.mubr.bf16.mxu1 %v615_v58 }
  0x2e   :  { %1875 = vmatprep.subr.bf16.mxu1 %v2397_v12 }
  0x2f   :  { %1848 = vmatpush3.bf16.msra.mxu0 %v2576_v51 }
  0x30   :  { %1849 = vmatprep.subr.bf16.mxu0 %v2582_v52 }
  0x31   :  { %1876 = vmatpush3.bf16.msra.mxu1 %v2403_v13 }
  0x32   :  { %1877 = vmatprep.subr.bf16.mxu1 %v2421_v16 }
  0x33   :  { %1850 = vmatpush3.bf16.msra.mxu0 %v2590_v53 }
  0x34   :  { %1851 = vmatprep.subr.bf16.mxu0 %v2596_v54 }
  0x35   :  { %1878 = vmatpush3.bf16.msra.mxu1 %v2427_v17 }
  0x36   :  { %1879 = vmatprep.subr.bf16.mxu1 %v2445_v20 }
  0x37   :  { %1852 = vmatpush3.bf16.msra.mxu0 %v2610_v59 }
  0x38   :  { %1853 = vmatprep.subr.bf16.mxu0 %v2616_v60 }
  0x39   :  { %1880 = vmatpush3.bf16.msra.mxu1 %v2451_v21 }
  0x3a   :  { %1881 = vmatprep.subr.bf16.mxu1 %v2469_v24 }
  0x3b   :  { %1854 = vmatpush3.bf16.msra.mxu0 %v2621_v61 }
  0x3c   :  { %1855 = vmatprep.subr.bf16.mxu0 %v2627_v62 }
  0x3d   :  { %1882 = vmatpush3.bf16.msra.mxu1 %v2475_v25 }
  0x3e   :  { %1883 = vmatprep.subr.bf16.mxu1 %v2493_v28 }
  0x3f   :  { %1856 = vmatpush3.bf16.msra.mxu0 %v2635_v63 }
  0x40   :  { %22 = vsyncpa [#allocation5], 0  ;;  %1897 = vmatprep.subr.bf16.mxu0 %v2337_v2  ;;  %v166_v35 = vunpack.c.h.u8.bf16 %v154_v55  ;;  %v614_v36 = vunpack.c.l.u8.bf16 %v608_v32  ;;  %v621_v38 = vunpack.c.h.u8.bf16 %v609_v57  ;;  %v611_v39 = vld [vmem:[%s2993_s0 + $0x48] sm:$0xff]  ;;  %v165_v41 = vunpack.c.h.u8.bf16 %v153_v31  ;;  %v613_v42 = vld [vmem:[%s2993_s0 + $0x58] sm:$0xff]  ;;  %s2232_s30 = smov 32   ;;  %s2234_s18 = smov 96  }
  0x41   :  { %1884 = vmatpush3.bf16.msra.mxu1 %v2499_v29  ;;  %v617_v43 = vunpack.c.l.u8.bf16 %v611_v39  ;;  %v620_v47 = vunpack.c.h.u8.bf16 %v608_v32  ;;  %v619_v50 = vunpack.c.l.u8.bf16 %v613_v42  ;;  %v610_v55 = vld [vmem:[%s2993_s0 + $0x40] sm:$0xff]  ;;  %v612_v57 = vld [vmem:[%s2993_s0 + $0x50] sm:$0xff]  ;;  %v623_v58 = vunpack.c.h.u8.bf16 %v611_v39  ;;  %s2238_s21 = smov [#allocation2]  }
  0x42   :  { %592 = vmatmul.mubr.bf16.vlgmr.msra.gmra.mxu0 %v159_v34  ;;  %1925 = vmatprep.subr.bf16.mxu1 %v2523_v37  ;;  %v616_v56 = vunpack.c.l.u8.bf16 %v610_v55  ;;  %v618_v31 = vunpack.c.l.u8.bf16 %v612_v57  ;;  %v625_v32 = vunpack.c.h.u8.bf16 %v613_v42  ;;  %v774_v34 = vld [vmem:[%s2993_s0 + $0x68] sm:$0xff]  ;;  %vm994_vm0 = vcmask 261120  }
  0x43   :  { %1898 = vmatpush3.bf16.msra.mxu0 %v2343_v3  ;;  %599 = vmatprep.mubr.bf16.mxu0 %v166_v35  ;;  %vm999_vm1 = vcmask 523264   ;;  %vm1004_vm2 = vcmask 785408   ;;  %vm1558_vm3 = vcmask 31744  }
  0x44   :  { %1899 = vmatprep.subr.bf16.mxu0 %v2361_v6  ;;  %659 = vmatmul.mubr.bf16.vlgmr.msra.gmra.mxu1 %v614_v36 }
  0x45   :  { %1926 = vmatpush3.bf16.msra.mxu1 %v2532_v40  ;;  %666 = vmatprep.mubr.bf16.mxu1 %v621_v38 }
  0x46   :  { %1927 = vmatprep.subr.bf16.mxu1 %v2542_v44 }
  0x47   :  { %1900 = vmatpush3.bf16.msra.mxu0 %v2367_v7 }
  0x48   :  { %1901 = vmatprep.subr.bf16.mxu0 %v2385_v10 }
  0x49   :  { %1928 = vmatpush3.bf16.msra.mxu1 %v2548_v45 }
  0x4a   :  { %600 = vmatmul.mubr.bf16.gmra.mxu0 %v165_v41  ;;  %1929 = vmatprep.subr.bf16.mxu1 %v2554_v46 }
  0x4b   :  { %1902 = vmatpush3.bf16.msra.mxu0 %v2391_v11  ;;  %707 = vmatprep.mubr.bf16.mxu0 %v617_v43 }
  0x4c   :  { %1903 = vmatprep.subr.bf16.mxu0 %v2409_v14  ;;  %667 = vmatmul.mubr.bf16.gmra.mxu1 %v620_v47 }
  0x4d   :  { %1930 = vmatpush3.bf16.msra.mxu1 %v2562_v48  ;;  %756 = vmatprep.mubr.bf16.mxu1 %v619_v50 }
  0x4e   :  { %1931 = vmatprep.subr.bf16.mxu1 %v2568_v49 }
  0x4f   :  { %1904 = vmatpush3.bf16.msra.mxu0 %v2415_v15 }
  0x50   :  { %1905 = vmatprep.subr.bf16.mxu0 %v2433_v18 }
  0x51   :  { %1932 = vmatpush3.bf16.msra.mxu1 %v2576_v51 }
  0x52   :  { %1933 = vmatprep.subr.bf16.mxu1 %v2582_v52 }
  0x53   :  { %1906 = vmatpush3.bf16.msra.mxu0 %v2439_v19 }
  0x54   :  { %1907 = vmatprep.subr.bf16.mxu0 %v2457_v22 }
  0x55   :  { %1934 = vmatpush3.bf16.msra.mxu1 %v2590_v53 }
  0x56   :  { %1935 = vmatprep.subr.bf16.mxu1 %v2596_v54 }
  0x57   :  { %1908 = vmatpush3.bf16.msra.mxu0 %v2463_v23 }
  0x58   :  { %1909 = vmatprep.subr.bf16.mxu0 %v2481_v26 }
  0x59   :  { %1936 = vmatpush3.bf16.msra.mxu1 %v2610_v59 }
  0x5a   :  { %1937 = vmatprep.subr.bf16.mxu1 %v2616_v60 }
  0x5b   :  { %1910 = vmatpush3.bf16.msra.mxu0 %v2487_v27 }
  0x5c   :  { %1911 = vmatprep.subr.bf16.mxu0 %v2505_v30 }
  0x5d   :  { %1938 = vmatpush3.bf16.msra.mxu1 %v2621_v61 }
  0x5e   :  { %1939 = vmatprep.subr.bf16.mxu1 %v2627_v62 }
  0x5f   :  { %1912 = vmatpush3.bf16.msra.mxu0 %v2515_v33 }
  0x60   :  { %1953 = vmatprep.subr.bf16.mxu0 %v2326_v0  ;;  %v622_v0 = vunpack.c.h.u8.bf16 %v610_v55 }
  0x61   :  { %1940 = vmatpush3.bf16.msra.mxu1 %v2635_v63 }
  0x62   :  { %708 = vmatmul.mubr.bf16.vlgmr.msra.gmra.mxu0 %v616_v56  ;;  %1981 = vmatprep.subr.bf16.mxu1 %v2337_v2  ;;  %v780_v2 = vunpack.c.l.u8.bf16 %v774_v34 }
  0x63   :  { %1954 = vmatpush3.bf16.msra.mxu0 %v2331_v1  ;;  %715 = vmatprep.mubr.bf16.mxu0 %v623_v58  ;;  %v776_v1 = vld [vmem:[%s2993_s0 + $0x78] sm:$0xff] }
  0x64   :  { %1955 = vmatprep.subr.bf16.mxu0 %v2349_v4  ;;  %757 = vmatmul.mubr.bf16.vlgmr.msra.gmra.mxu1 %v618_v31  ;;  %v624_v4 = vunpack.c.h.u8.bf16 %v612_v57  ;;  %v782_v35 = vunpack.c.l.u8.bf16 %v776_v1 }
  0x65   :  { %1982 = vmatpush3.bf16.msra.mxu1 %v2343_v3  ;;  %764 = vmatprep.mubr.bf16.mxu1 %v625_v32  ;;  %v773_v3 = vld [vmem:[%s2993_s0 + $0x60] sm:$0xff] }
  0x66   :  { %1983 = vmatprep.subr.bf16.mxu1 %v2361_v6  ;;  %v775_v6 = vld [vmem:[%s2993_s0 + $0x70] sm:$0xff] }
  0x67   :  { %1956 = vmatpush3.bf16.msra.mxu0 %v2355_v5  ;;  %v779_v5 = vunpack.c.l.u8.bf16 %v773_v3 }
  0x68   :  { %1957 = vmatprep.subr.bf16.mxu0 %v2373_v8  ;;  %v781_v8 = vunpack.c.l.u8.bf16 %v775_v6 }
  0x69   :  { %1984 = vmatpush3.bf16.msra.mxu1 %v2367_v7  ;;  %v786_v7 = vunpack.c.h.u8.bf16 %v774_v34 }
  0x6a   :  { %716 = vmatmul.mubr.bf16.gmra.mxu0 %v622_v0  ;;  %1985 = vmatprep.subr.bf16.mxu1 %v2385_v10  ;;  %v778_v10 = vld [vmem:[%s2993_s0 + $0x88] sm:$0xff] }
  0x6b   :  { %1958 = vmatpush3.bf16.msra.mxu0 %v2379_v9  ;;  %823 = vmatprep.mubr.bf16.mxu0 %v780_v2  ;;  %v788_v9 = vunpack.c.h.u8.bf16 %v776_v1 }
  0x6c   :  { %1959 = vmatprep.subr.bf16.mxu0 %v2397_v12  ;;  %765 = vmatmul.mubr.bf16.gmra.mxu1 %v624_v4  ;;  %v784_v12 = vunpack.c.l.u8.bf16 %v778_v10 }
  0x6d   :  { %1986 = vmatpush3.bf16.msra.mxu1 %v2391_v11  ;;  %872 = vmatprep.mubr.bf16.mxu1 %v782_v35  ;;  %v785_v11 = vunpack.c.h.u8.bf16 %v773_v3 }
  0x6e   :  { %1987 = vmatprep.subr.bf16.mxu1 %v2409_v14  ;;  %v777_v14 = vld [vmem:[%s2993_s0 + $0x80] sm:$0xff] }
  0x6f   :  { %1960 = vmatpush3.bf16.msra.mxu0 %v2403_v13  ;;  %v787_v13 = vunpack.c.h.u8.bf16 %v775_v6 }
  0x70   :  { %1961 = vmatprep.subr.bf16.mxu0 %v2421_v16  ;;  %v790_v16 = vunpack.c.h.u8.bf16 %v778_v10 }
  0x71   :  { %1988 = vmatpush3.bf16.msra.mxu1 %v2415_v15  ;;  %v783_v15 = vunpack.c.l.u8.bf16 %v777_v14 }
  0x72   :  { %1989 = vmatprep.subr.bf16.mxu1 %v2433_v18 }
  0x73   :  { %1962 = vmatpush3.bf16.msra.mxu0 %v2427_v17  ;;  %v789_v17 = vunpack.c.h.u8.bf16 %v777_v14 }
  0x74   :  { %1963 = vmatprep.subr.bf16.mxu0 %v2445_v20 }
  0x75   :  { %1990 = vmatpush3.bf16.msra.mxu1 %v2439_v19 }
  0x76   :  { %1991 = vmatprep.subr.bf16.mxu1 %v2457_v22 }
  0x77   :  { %1964 = vmatpush3.bf16.msra.mxu0 %v2451_v21 }
  0x78   :  { %1965 = vmatprep.subr.bf16.mxu0 %v2469_v24 }
  0x79   :  { %1992 = vmatpush3.bf16.msra.mxu1 %v2463_v23 }
  0x7a   :  { %1993 = vmatprep.subr.bf16.mxu1 %v2481_v26 }
  0x7b   :  { %1966 = vmatpush3.bf16.msra.mxu0 %v2475_v25 }
  0x7c   :  { %1967 = vmatprep.subr.bf16.mxu0 %v2493_v28 }
  0x7d   :  { %1994 = vmatpush3.bf16.msra.mxu1 %v2487_v27 }
  0x7e   :  { %1995 = vmatprep.subr.bf16.mxu1 %v2505_v30  ;;  %v2764_v30 = vld [vmem:[%s2995_s2] ss:$0 sm:$0xff] }
  0x7f   :  { %1968 = vmatpush3.bf16.msra.mxu0 %v2499_v29 }
  0x80   :  { %2009 = vmatprep.subr.bf16.mxu0 %v2523_v37 }
  0x81   :  { %1996 = vmatpush3.bf16.msra.mxu1 %v2515_v33 }
  0x82   :  { %824 = vmatmul.mubr.bf16.vlgmr.msra.gmra.mxu0 %v779_v5 }
  0x83   :  { %2010 = vmatpush3.bf16.msra.mxu0 %v2532_v40  ;;  %831 = vmatprep.mubr.bf16.mxu0 %v786_v7 }
  0x84   :  { %2011 = vmatprep.subr.bf16.mxu0 %v2542_v44  ;;  %873 = vmatmul.mubr.bf16.vlgmr.msra.gmra.mxu1 %v781_v8 }
  0x85   :  { %880 = vmatprep.mubr.bf16.mxu1 %v788_v9 }
  0x87   :  { %2012 = vmatpush3.bf16.msra.mxu0 %v2548_v45 }
  0x88   :  { %2013 = vmatprep.subr.bf16.mxu0 %v2554_v46 }
  0x8a   :  { %832 = vmatmul.mubr.bf16.gmra.mxu0 %v785_v11 }
  0x8b   :  { %2014 = vmatpush3.bf16.msra.mxu0 %v2562_v48  ;;  %921 = vmatprep.mubr.bf16.mxu0 %v784_v12 }
  0x8c   :  { %2015 = vmatprep.subr.bf16.mxu0 %v2568_v49  ;;  %881 = vmatmul.mubr.bf16.gmra.mxu1 %v787_v13 }
  0x8f   :  { %2016 = vmatpush3.bf16.msra.mxu0 %v2576_v51 }
  0x90   :  { %2017 = vmatprep.subr.bf16.mxu0 %v2582_v52 }
  0x93   :  { %2018 = vmatpush3.bf16.msra.mxu0 %v2590_v53 }
  0x94   :  { %2019 = vmatprep.subr.bf16.mxu0 %v2596_v54 }
  0x97   :  { %2020 = vmatpush3.bf16.msra.mxu0 %v2610_v59 }
  0x98   :  { %2021 = vmatprep.subr.bf16.mxu0 %v2616_v60 }
  0x9b   :  { %2022 = vmatpush3.bf16.msra.mxu0 %v2621_v61 }
  0x9c   :  { %2023 = vmatprep.subr.bf16.mxu0 %v2627_v62 }
  0x9f   :  { %2024 = vmatpush3.bf16.msra.mxu0 %v2635_v63 }
  0xa2   :  { %922 = vmatmul.mubr.bf16.vlgmr.msra.gmra.mxu0 %v783_v15 }
  0xa3   :  { %929 = vmatprep.mubr.bf16.mxu0 %v790_v16 }
  0xaa   :  { %930 = vmatmul.mubr.bf16.gmra.mxu0 %v789_v17 }
  0xe2   :  { %v1801_v18 = vpop.f32.mrf.mxu0 }
  0xe4   :  { %v1802_v19 = vpop.f32.mrf.mxu0  ;;  %v1829_v20 = vpop.f32.mrf.mxu1 }
  0xe5   :  { %v1803_v2 = vadd.f32 %v1802_v19, %v1801_v18 }
  0xe6   :  { %v1804_v21 = vpop.f32.mrf.mxu0  ;;  %v1830_v22 = vpop.f32.mrf.mxu1 }
  0xe7   :  { %v496_v9 = vadd.f32 %v1803_v2, %v2764_v30  ;;  %v1831_v10 = vadd.f32 %v1830_v22, %v1829_v20 }
  0xe8   :  { %v1805_v23 = vpop.f32.mrf.mxu0  ;;  %v1832_v24 = vpop.f32.mrf.mxu1 }
  0xe9   :  { %v1806_v35 = vadd.f32 %v1805_v23, %v1804_v21 }
  0xea   :  { %v1807_v25 = vpop.f32.mrf.mxu0  ;;  %v1833_v26 = vpop.f32.mrf.mxu1 }
  0xeb   :  { %v499_v12 = vadd.f32 %v1806_v35, %v2764_v30  ;;  %v1834_v13 = vadd.f32 %v1833_v26, %v1832_v24  ;;  %v2132_v24 = vld [vmem:[%s2996_s3 + $0x38] sm:$0xff]  }
  0xec   :  { %v1808_v27 = vpop.f32.mrf.mxu0  ;;  %v1835_v29 = vpop.f32.mrf.mxu1 }
  0xed   :  { %v1809_v28 = vadd.f32 %v1808_v27, %v1807_v25  ;;  %v545_v27 = vadd.f32 %v1831_v10, %v496_v9  ;;  %v548_v20 = vadd.f32 %v1834_v13, %v499_v12  ;;  %v2141_v12 = vld [vmem:[%s2996_s3 + $0x40] sm:$0xff]  }
  0xee   :  { %v1810_v33 = vpop.f32.mrf.mxu0  ;;  %v1836_v40 = vpop.f32.mrf.mxu1 }
  0xef   :  { %v504_v37 = vadd.f32 %v1809_v28, %v2764_v30  ;;  %v1837_v44 = vadd.f32 %v1836_v40, %v1835_v29 }
  0xf0   :  { %v1811_v45 = vpop.f32.mrf.mxu0  ;;  %v1838_v48 = vpop.f32.mrf.mxu1 }
  0xf1   :  { %v1812_v46 = vadd.f32 %v1811_v45, %v1810_v33  ;;  %v553_v49 = vadd.f32 %v1837_v44, %v504_v37  ;;  %v2233_v45 = vmov 0  }
  0xf2   :  { %v1839_v52 = vpop.f32.mrf.mxu1  ;;  %1127 = vmatprep.subr.bf16.mxu1 %v2233_v45 }
  0xf3   :  { %v507_v51 = vadd.f32 %v1812_v46, %v2764_v30  ;;  %v1840_v53 = vadd.f32 %v1839_v52, %v1838_v48  ;;  %1128 = vmatpush1.bf16.msra.mxu1 %v2132_v24 }
  0xf4   :  { %1129 = vmatprep.subr.bf16.mxu1 %v2233_v45 }
  0xf5   :  { %v556_v54 = vadd.f32 %v1840_v53, %v507_v51 }
 0x102   :  { %v1857_v59 = vpop.f32.mrf.mxu0 }
 0x104   :  { %v1858_v60 = vpop.f32.mrf.mxu0  ;;  %v1885_v61 = vpop.f32.mrf.mxu1 }
 0x105   :  { %v1859_v16 = vadd.f32 %v1858_v60, %v1857_v59 }
 0x106   :  { %v1860_v62 = vpop.f32.mrf.mxu0  ;;  %v1886_v63 = vpop.f32.mrf.mxu1 }
 0x107   :  { %v1887_v1 = vadd.f32 %v1886_v63, %v1885_v61  ;;  %v2783_v26 = vadd.f32 %v1859_v16, %v545_v27  ;;  %v2134_v61 = vld [vmem:[%s2996_s3 + $0x28] sm:$0xff]  }
 0x108   :  { %v1861_v36 = vpop.f32.mrf.mxu0  ;;  %v1888_v38 = vpop.f32.mrf.mxu1 }
 0x109   :  { %v661_v3 = vadd.f32 %v1887_v1, %v2764_v30  ;;  %v1862_v19 = vadd.f32 %v1861_v36, %v1860_v62  ;;  %v2135_v36 = vld [vmem:[%s2996_s3 + $0x20] sm:$0xff]  }
 0x10a   :  { %v1863_v39 = vpop.f32.mrf.mxu0  ;;  %v1889_v41 = vpop.f32.mrf.mxu1 }
 0x10b   :  { %v1890_v6 = vadd.f32 %v1889_v41, %v1888_v38  ;;  %v2787_v46 = vadd.f32 %v1862_v19, %v548_v20  ;;  %v2137_v41 = vld [vmem:[%s2996_s3 + $0x10] sm:$0xff]  }
 0x10c   :  { %v1864_v42 = vpop.f32.mrf.mxu0  ;;  %v1891_v47 = vpop.f32.mrf.mxu1 }
 0x10d   :  { %v1865_v43 = vadd.f32 %v1864_v42, %v1863_v39  ;;  %v664_v21 = vadd.f32 %v1890_v6, %v2764_v30  ;;  %v2136_v39 = vld [vmem:[%s2996_s3 + $0x18] sm:$0xff]  }
 0x10e   :  { %v1866_v50 = vpop.f32.mrf.mxu0  ;;  %v1892_v56 = vpop.f32.mrf.mxu1 }
 0x10f   :  { %v2768_v55 = vadd.f32 %v1865_v43, %v553_v49  ;;  %v1893_v28 = vadd.f32 %v1892_v56, %v1891_v47  ;;  %v2133_v49 = vld [vmem:[%s2996_s3 + $0x30] sm:$0xff]   ;;  %v2138_v43 = vld [vmem:[%s2996_s3 + $0x8] sm:$0xff]  }
 0x110   :  { %v1867_v57 = vpop.f32.mrf.mxu0  ;;  %v1894_v31 = vpop.f32.mrf.mxu1  ;;  %1130 = vmatpush1.bf16.msra.mxu1 %v2133_v49 }
 0x111   :  { %v1868_v58 = vadd.f32 %v1867_v57, %v1866_v50  ;;  %v669_v51 = vadd.f32 %v1893_v28, %v2764_v30  ;;  %1131 = vmatprep.subr.bf16.mxu1 %v2233_v45  ;;  %v2139_v50 = vld [vmem:[%s2996_s3] sm:$0xff]  }
 0x112   :  { %v1895_v34 = vpop.f32.mrf.mxu1 }
 0x113   :  { %v2770_v32 = vadd.f32 %v1868_v58, %v556_v54  ;;  %v2772_v0 = vadd.f32 %v1895_v34, %v1894_v31 }
 0x114   :  { %1132 = vmatpush1.bf16.msra.mxu1 %v2134_v61 }
 0x115   :  { %1133 = vmatprep.subr.bf16.mxu1 %v2233_v45  ;;  %v672_v20 = vadd.f32 %v2772_v0, %v2764_v30 }
 0x118   :  { %1134 = vmatpush1.bf16.msra.mxu1 %v2135_v36 }
 0x119   :  { %1135 = vmatprep.subr.bf16.mxu1 %v2233_v45 }
 0x11c   :  { %1136 = vmatpush1.bf16.msra.mxu1 %v2136_v39 }
 0x11d   :  { %1137 = vmatprep.subr.bf16.mxu1 %v2233_v45 }
 0x120   :  { %1138 = vmatpush1.bf16.msra.mxu1 %v2137_v41 }
 0x121   :  { %1139 = vmatprep.subr.bf16.mxu1 %v2233_v45 }
 0x122   :  { %v1913_v4 = vpop.f32.mrf.mxu0 }
 0x124   :  { %v1914_v5 = vpop.f32.mrf.mxu0  ;;  %v1941_v8 = vpop.f32.mrf.mxu1  ;;  %1140 = vmatpush1.bf16.msra.mxu1 %v2138_v43 }
 0x125   :  { %v1915_v7 = vadd.f32 %v1914_v5, %v1913_v4  ;;  %1141 = vmatprep.subr.bf16.mxu1 %v2233_v45 }
 0x126   :  { %v1916_v11 = vpop.f32.mrf.mxu0  ;;  %v1942_v15 = vpop.f32.mrf.mxu1 }
 0x127   :  { %v710_v14 = vadd.f32 %v1915_v7, %v661_v3  ;;  %v1943_v17 = vadd.f32 %v1942_v15, %v1941_v8  ;;  %v2140_v8 = vld [vmem:[%s2996_s3 + $0x48] sm:$0xff]   ;;  %s2235_s3 = smov 64  }
 0x128   :  { %v1917_v18 = vpop.f32.mrf.mxu0  ;;  %v1944_v25 = vpop.f32.mrf.mxu1  ;;  %1142 = vmatpush1.bf16.msra.mxu1 %v2139_v50 }
 0x129   :  { %v1918_v23 = vadd.f32 %v1917_v18, %v1916_v11  ;;  %v2778_v29 = vadd.f32 %v1943_v17, %v710_v14  ;;  %1155 = vmatprep.subr.bf16.mxu1 %v2233_v45 }
 0x12a   :  { %v1919_v33 = vpop.f32.mrf.mxu0  ;;  %v1945_v37 = vpop.f32.mrf.mxu1 }
 0x12b   :  { %v713_v22 = vadd.f32 %v1918_v23, %v664_v21  ;;  %v1946_v40 = vadd.f32 %v1945_v37, %v1944_v25  ;;  %950 = vrot.lane.b32.xlu0 %v2778_v29, %s2232_s30  ;;  %v938_v54 = vsub.f32 %v2778_v29, %v2783_v26 }
 0x12c   :  { %v1920_v44 = vpop.f32.mrf.mxu0  ;;  %v1947_v48 = vpop.f32.mrf.mxu1  ;;  %1156 = vmatpush2.bf16.msra.mxu1 %v2140_v8 }
 0x12d   :  { %v2793_v52 = vadd.f32 %v1946_v40, %v713_v22  ;;  %v1921_v53 = vadd.f32 %v1920_v44, %v1919_v33  ;;  %1157 = vmatprep.subr.bf16.mxu1 %v2233_v45 }
 0x12e   :  { %v1948_v59 = vpop.f32.mrf.mxu1  ;;  %v1922_v42 = vpop.f32.mrf.mxu0 }
 0x12f   :  { %982 = vrot.lane.b32.xlu0 %v938_v54, %s2234_s18  ;;  %v939_v60 = vsub.f32 %v2793_v52, %v2787_v46  ;;  %v718_v62 = vadd.f32 %v1921_v53, %v669_v51  ;;  %v1949_v63 = vadd.f32 %v1948_v59, %v1947_v48 }
 0x130   :  { %v1923_v47 = vpop.f32.mrf.mxu0  ;;  %v1950_v57 = vpop.f32.mrf.mxu1  ;;  %1158 = vmatpush2.bf16.msra.mxu1 %v2141_v12 }
 0x131   :  { %984 = vrot.lane.b32.xlu1 %v939_v60, %s2234_s18  ;;  %v2809_v38 = vadd.f32 %v1949_v63, %v718_v62  ;;  %v1924_v22 = vadd.f32 %v1923_v47, %v1922_v42 }
 0x132   :  { %v1951_v31 = vpop.f32.mrf.mxu1 }
 0x133   :  { %952 = vrot.lane.b32.xlu0 %v2793_v52, %s2232_s30  ;;  %v721_v59 = vadd.f32 %v1924_v22, %v672_v20  ;;  %v1952_v60 = vadd.f32 %v1951_v31, %v1950_v57 }
 0x135   :  { %v770_v43 = vadd.f32 %v1952_v60, %v721_v59 }
 0x137   :  { %954 = vrot.lane.b32.xlu0 %v2809_v38, %s2232_s30 }
 0x142   :  { %v1969_v56 = vpop.f32.mrf.mxu0 }
 0x144   :  { %v1970_v58 = vpop.f32.mrf.mxu0  ;;  %v1997_v1 = vpop.f32.mrf.mxu1 }
 0x145   :  { %v1971_v9 = vadd.f32 %v1970_v58, %v1969_v56 }
 0x146   :  { %v1972_v34 = vpop.f32.mrf.mxu0  ;;  %v1998_v4 = vpop.f32.mrf.mxu1 }
 0x147   :  { %v826_v13 = vadd.f32 %v1971_v9, %v2764_v30  ;;  %v1999_v14 = vadd.f32 %v1998_v4, %v1997_v1  ;;  %v940_v1 = vsub.f32 %v2809_v38, %v2768_v55 }
 0x148   :  { %v1973_v2 = vpop.f32.mrf.mxu0  ;;  %v2000_v3 = vpop.f32.mrf.mxu1 }
 0x149   :  { %v1974_v15 = vadd.f32 %v1973_v2, %v1972_v34  ;;  %v875_v21 = vadd.f32 %v1999_v14, %v826_v13 }
 0x14a   :  { %v1975_v35 = vpop.f32.mrf.mxu0  ;;  %v2001_v6 = vpop.f32.mrf.mxu1 }
 0x14b   :  { %v829_v23 = vadd.f32 %v1974_v15, %v2764_v30  ;;  %v2002_v25 = vadd.f32 %v2001_v6, %v2000_v3  ;;  %v941_v3 = vsub.f32 %v770_v43, %v2770_v32 }
 0x14c   :  { %v1976_v5 = vpop.f32.mrf.mxu0  ;;  %v2003_v10 = vpop.f32.mrf.mxu1 }
 0x14d   :  { %v1977_v18 = vadd.f32 %v1976_v5, %v1975_v35  ;;  %v878_v45 = vadd.f32 %v2002_v25, %v829_v23 }
 0x14e   :  { %v1978_v7 = vpop.f32.mrf.mxu0  ;;  %v2004_v16 = vpop.f32.mrf.mxu1 }
 0x14f   :  { %v834_v24 = vadd.f32 %v1977_v18, %v2764_v30  ;;  %v2005_v40 = vadd.f32 %v2004_v16, %v2003_v10 }
 0x150   :  { %v1979_v11 = vpop.f32.mrf.mxu0  ;;  %v2006_v28 = vpop.f32.mrf.mxu1 }
 0x151   :  { %v1980_v48 = vadd.f32 %v1979_v11, %v1978_v7  ;;  %v883_v62 = vadd.f32 %v2005_v40, %v834_v24 }
 0x152   :  { %v2007_v53 = vpop.f32.mrf.mxu1 }
 0x153   :  { %v837_v36 = vadd.f32 %v1980_v48, %v2764_v30  ;;  %v2008_v39 = vadd.f32 %v2007_v53, %v2006_v28 }
 0x155   :  { %v886_v58 = vadd.f32 %v2008_v39, %v837_v36 }
 0x162   :  { %v2025_v17 = vpop.f32.mrf.mxu0 }
 0x164   :  { %v2026_v19 = vpop.f32.mrf.mxu0 }
 0x165   :  { %v2027_v27 = vadd.f32 %v2026_v19, %v2025_v17 }
 0x166   :  { %v2028_v33 = vpop.f32.mrf.mxu0 }
 0x167   :  { %v924_v37 = vadd.f32 %v2027_v27, %v875_v21 }
 0x168   :  { %v2029_v44 = vpop.f32.mrf.mxu0 }
 0x169   :  { %v942_v49 = vsub.f32 %v924_v37, %v2778_v29  ;;  %v2030_v51 = vadd.f32 %v2029_v44, %v2028_v33  ;;  %966 = vrot.lane.b32.xlu1 %v924_v37, %s2235_s3 }
 0x16a   :  { %v2031_v54 = vpop.f32.mrf.mxu0 }
 0x16b   :  { %v1619_v0 = vsel %vm994_vm0, %v942_v49, 0.0  ;;  %v927_v61 = vadd.f32 %v2030_v51, %v878_v45 }
 0x16c   :  { %1624 = vst [vmem:[#allocation2 + $0x8] sm:$0xff] %v1619_v0  ;;  %v2032_v63 = vpop.f32.mrf.mxu0 }
 0x16d   :  { %v943_v41 = vsub.f32 %v927_v61, %v2793_v52  ;;  %v2033_v29 = vadd.f32 %v2032_v63, %v2031_v54  ;;  %968 = vrot.lane.b32.xlu1 %v927_v61, %s2235_s3 }
 0x16e   :  { %v2034_v42 = vpop.f32.mrf.mxu0 }
 0x16f   :  { %v1052_v47 = vpack.c.bf16 %v943_v41, %v942_v49  ;;  %v1620_v50 = vsel %vm994_vm0, %v943_v41, 0.0  ;;  %v932_v56 = vadd.f32 %v2033_v29, %v883_v62 }
 0x170   :  { %1626 = vst [vmem:[#allocation2 + $0x18] sm:$0xff] %v1620_v50  ;;  %v2035_v57 = vpop.f32.mrf.mxu0 }
 0x171   :  { %v944_v31 = vsub.f32 %v932_v56, %v2809_v38  ;;  %v2036_v34 = vadd.f32 %v2035_v57, %v2034_v42  ;;  %1762 = vmatprep.mubr.msk.bf16.mxu1 %vm994_vm0, %v1052_v47  ;;  %956 = vrot.lane.b32.xlu1 %v770_v43, %s2232_s30 }
 0x172   :  { %970 = vrot.lane.b32.xlu0 %v932_v56, %s2235_s3 }
 0x173   :  { %v1621_v30 = vsel %vm994_vm0, %v944_v31, 0.0  ;;  %v935_v52 = vadd.f32 %v2036_v34, %v886_v58 }
 0x174   :  { %1628 = vst [vmem:[#allocation2 + $0x28] sm:$0xff] %v1621_v30 }
 0x175   :  { %v945_v2 = vsub.f32 %v935_v52, %v770_v43  ;;  %972 = vrot.lane.b32.xlu1 %v935_v52, %s2235_s3 }
 0x176   :  { %986 = vrot.lane.b32.xlu0 %v940_v1, %s2234_s18 }
 0x177   :  { %v1054_v4 = vpack.c.bf16 %v945_v2, %v944_v31  ;;  %v1622_v35 = vsel %vm994_vm0, %v945_v2, 0.0 }
 0x178   :  { %1630 = vst [vmem:[#allocation2 + $0x38] sm:$0xff] %v1622_v35 }
 0x179   :  { %988 = vrot.lane.b32.xlu1 %v941_v3, %s2234_s18  ;;  %v2142_v3 = vld [vmem:[%s3000_s7 + $0x8] sm:$0xff]  }
 0x17a   :  { %2049 = vmatprep.subr.bf16.mxu0 %v2142_v3 }
 0x17b   :  { %2050 = vmatpush3.bf16.msra.mxu0 %v2142_v3 }
 0x19d   :  { %v951_v5 = vpop.permute.xlu0 %950 }
 0x19e   :  { %v995_v38 = vsel %vm994_vm0, %v2783_v26, %v951_v5  ;;  %v2143_v5 = vld [vmem:[%s3000_s7] sm:$0xff]   ;;  %s1675_s7 = sshll.u32 %s2238_s21, 4  ;;  %s1676_s7 = int_to_ptr.vmem [resolvable:$true] %s1675_s7 }
 0x19f   :  { %2051 = vmatprep.subr.bf16.mxu0 %v2143_v5  ;;  %s2188_s22 = scalar_lea.vmem %s1676_s7, 1024  ;;  %p2193_p1 = scmp.lt.s32.totalorder %s1676_s7, %s1676_s7 }
 0x1a0   :  { %2052 = vmatpush3.bf16.msra.mxu0 %v2143_v5  ;;  %p2189_p0 = scmp.ne.s32.totalorder %s1676_s7, %s2188_s22  ;;  %p2194_p2 = scmp.lt.s32.totalorder %s2188_s22, %s2188_s22 }
 0x1a1   :  { %v983_v6 = vpop.permute.xlu0 %982 }
 0x1a2   :  { %p2195_p3 = por %p2194_p2, %p2193_p1 }
 0x1a3   :  { %v985_v7 = vpop.permute.xlu1 %984 }
 0x1a4   :  { %p2196_p4 = pnand %p2195_p3, %p2189_p0 }
 0x1a5   :  { %v953_v8 = vpop.permute.xlu0 %952 }
 0x1a6   :  { %v996_v12 = vsel %vm994_vm0, %v2787_v46, %v953_v8 }
 0x1a9   :  { %v955_v14 = vpop.permute.xlu0 %954 }
 0x1aa   :  { %v997_v26 = vsel %vm994_vm0, %v2768_v55, %v955_v14  ;;  %v1751_v55 = vld [vmem:[%s2997_s4] ss:$0 sm:$0xff] }
 0x1db   :  { %v967_v9 = vpop.permute.xlu1 %966 }
 0x1dc   :  { %v1000_v10 = vsel %vm999_vm1, %v995_v38, %v967_v9 }
 0x1dd   :  { %v1005_v11 = vsel %vm1004_vm2, %v1000_v10, %v983_v6 }
 0x1de   :  { %1623 = vst [vmem:[#allocation2] sm:$0xff] %v1005_v11 }
 0x1df   :  { %v969_v13 = vpop.permute.xlu1 %968 }
 0x1e0   :  { %v1001_v15 = vsel %vm999_vm1, %v996_v12, %v969_v13 }
 0x1e1   :  { %v1006_v16 = vsel %vm1004_vm2, %v1001_v15, %v985_v7 }
 0x1e2   :  { %v1051_v17 = vpack.c.bf16 %v1006_v16, %v1005_v11  ;;  %1625 = vst [vmem:[#allocation2 + $0x10] sm:$0xff] %v1006_v16 }
 0x1e3   :  { %v957_v18 = vpop.permute.xlu1 %956 }
 0x1e4   :  { %v971_v19 = vpop.permute.xlu0 %970  ;;  %1160 = vmatmul.mubr.bf16.vlgmr.msra.gmra.mxu1 %v1051_v17  ;;  %v998_v27 = vsel %vm994_vm0, %v2770_v32, %v957_v18 }
 0x1e5   :  { %1763 = vmatprep.mubr.msk.bf16.mxu1 %vm994_vm0, %v1054_v4  ;;  %v1002_v23 = vsel %vm999_vm1, %v997_v26, %v971_v19  ;;  %v1764_v19 = vld [vmem:[%s2998_s5] ss:$0 sm:$0xff] }
 0x1e7   :  { %v973_v21 = vpop.permute.xlu1 %972 }
 0x1e8   :  { %v987_v46 = vpop.permute.xlu0 %986  ;;  %v1003_v28 = vsel %vm999_vm1, %v998_v27, %v973_v21 }
 0x1e9   :  { %v1007_v25 = vsel %vm1004_vm2, %v1002_v23, %v987_v46  ;;  %v1765_v46 = vld [vmem:[%s2999_s6] ss:$0 sm:$0xff] }
 0x1ea   :  { %1627 = vst [vmem:[#allocation2 + $0x20] sm:$0xff] %v1007_v25 }
 0x1eb   :  { %v989_v33 = vpop.permute.xlu1 %988 }
 0x1ec   :  { %v1008_v20 = vsel %vm1004_vm2, %v1003_v28, %v989_v33 }
 0x1ed   :  { %v1053_v22 = vpack.c.bf16 %v1008_v20, %v1007_v25  ;;  %1629 = vst [vmem:[#allocation2 + $0x30] sm:$0xff] %v1008_v20 }
 0x1ef   :  { %1168 = vmatmul.mubr.bf16.gmra.mxu1 %v1053_v22 }
 0x2a4   :  { %v1161_v37 = vpop.f32.mrf.mxu1 }
 0x2a5   :  { %v1162_v24 = vadd.f32 %v1751_v55, %v1161_v37 }
 0x2a6   :  { %v1163_v40 = vpop.f32.mrf.mxu1 }
 0x2a7   :  { %v1176_v44 = vsel %vm994_vm0, %v1162_v24, 0.0 }
 0x2a8   :  { %v1164_v45 = vpop.f32.mrf.mxu1  ;;  %1177 = vadd.xlane.f32.xlu0 %v1176_v44 }
 0x2a9   :  { %v1165_v32 = vadd.f32 %v1751_v55, %v1164_v45 }
 0x2aa   :  { %v1166_v48 = vpop.f32.mrf.mxu1 }
 0x2ab   :  { %v1179_v49 = vsel %vm994_vm0, %v1165_v32, 0.0  ;;  %v2144_v48 = vld [vmem:[%s3002_s9 + $0x8] sm:$0xff]  }
 0x2ac   :  { %1180 = vadd.xlane.f32.xlu1 %v1179_v49  ;;  %2057 = vmatprep.subr.bf16.mxu0 %v2144_v48  ;;  %v2145_v49 = vld [vmem:[%s3002_s9] sm:$0xff]  }
 0x2af   :  { %v1169_v51 = vpop.f32.mrf.mxu1 }
 0x2b0   :  { %v1170_v53 = vadd.f32 %v1751_v55, %v1169_v51  ;;  %v2146_v51 = vld [vmem:[%s3004_s11 + $0x8] sm:$0xff]  }
 0x2b1   :  { %v1171_v54 = vpop.f32.mrf.mxu1  ;;  %2065 = vmatprep.subr.bf16.mxu1 %v2146_v51 }
 0x2b2   :  { %v1182_v59 = vsel %vm994_vm0, %v1170_v53, 0.0  ;;  %2066 = vmatpush3.bf16.msra.mxu1 %v2146_v51 }
 0x2b3   :  { %v1172_v60 = vpop.f32.mrf.mxu1  ;;  %1183 = vadd.xlane.f32.xlu0 %v1182_v59  ;;  %v1766_v59 = vld [vmem:[%s3001_s8] ss:$0 sm:$0xff] }
 0x2b4   :  { %v1173_v0 = vadd.f32 %v1751_v55, %v1172_v60 }
 0x2b5   :  { %v1174_v61 = vpop.f32.mrf.mxu1 }
 0x2b6   :  { %v1185_v62 = vsel %vm994_vm0, %v1173_v0, 0.0 }
 0x2b7   :  { %1186 = vadd.xlane.f32.xlu0 %v1185_v62 }
 0x331   :  { %v1178_v63 = vpop.xlane.xlu0 %1177 }
 0x332   :  { %v1189_v36 = vmul.f32 0.03125, %v1178_v63 }
 0x334   :  { %v1193_v39 = vsub.f32 %v1162_v24, %v1189_v36 }
 0x335   :  { %v1181_v41 = vpop.xlane.xlu1 %1180 }
 0x336   :  { %v1190_v29 = vmul.f32 0.03125, %v1181_v41  ;;  %v1197_v42 = vmul.f32 %v1193_v39, %v1193_v39 }
 0x338   :  { %v1194_v43 = vsub.f32 %v1165_v32, %v1190_v29  ;;  %v1201_v47 = vsel %vm994_vm0, %v1197_v42, 0.0 }
 0x339   :  { %1202 = vadd.xlane.f32.xlu1 %v1201_v47 }
 0x33a   :  { %v1198_v50 = vmul.f32 %v1194_v43, %v1194_v43 }
 0x33c   :  { %v1184_v56 = vpop.xlane.xlu0 %1183  ;;  %v1204_v57 = vsel %vm994_vm0, %v1198_v50, 0.0  ;;  %v2147_v50 = vld [vmem:[%s3004_s11] sm:$0xff]  }
 0x33d   :  { %v1191_v58 = vmul.f32 0.03125, %v1184_v56  ;;  %1205 = vadd.xlane.f32.xlu0 %v1204_v57  ;;  %2067 = vmatprep.subr.bf16.mxu1 %v2147_v50 }
 0x33e   :  { %2068 = vmatpush3.bf16.msra.mxu1 %v2147_v50 }
 0x33f   :  { %v1195_v31 = vsub.f32 %v1170_v53, %v1191_v58  ;;  %v1771_v58 = vld [vmem:[%s3003_s10] ss:$0 sm:$0xff]  ;;  %s2236_s10 = smov 124  }
 0x340   :  { %v1187_v34 = vpop.xlane.xlu0 %1186 }
 0x341   :  { %v1192_v30 = vmul.f32 0.03125, %v1187_v34  ;;  %v1199_v52 = vmul.f32 %v1195_v31, %v1195_v31 }
 0x343   :  { %v1196_v1 = vsub.f32 %v1173_v0, %v1192_v30  ;;  %v1207_v2 = vsel %vm994_vm0, %v1199_v52, 0.0 }
 0x344   :  { %1208 = vadd.xlane.f32.xlu1 %v1207_v2 }
 0x345   :  { %v1200_v4 = vmul.f32 %v1196_v1, %v1196_v1 }
 0x347   :  { %v1210_v35 = vsel %vm994_vm0, %v1200_v4, 0.0 }
 0x348   :  { %1211 = vadd.xlane.f32.xlu0 %v1210_v35 }
 0x3c2   :  { %v1203_v6 = vpop.xlane.xlu1 %1202 }
 0x3c3   :  { %v1213_v7 = vmul.f32 0.03125, %v1203_v6 }
 0x3c5   :  { %v1217_v8 = vadd.f32 1e-05, %v1213_v7 }
 0x3c6   :  { %v1206_v38 = vpop.xlane.xlu0 %1205 }
 0x3c7   :  { %2148 = vrsqrt.f32 %v1217_v8  ;;  %v1214_v9 = vmul.f32 0.03125, %v1206_v38  ;;  %v1776_v8 = vld [vmem:[%s3005_s12] ss:$0 sm:$0xff] }
 0x3c9   :  { %v1218_v10 = vadd.f32 1e-05, %v1214_v9 }
 0x3cb   :  { %2150 = vrsqrt.f32 %v1218_v10 }
 0x3cd   :  { %v1209_v11 = vpop.xlane.xlu1 %1208 }
 0x3ce   :  { %v1215_v12 = vmul.f32 0.03125, %v1209_v11 }
 0x3d0   :  { %v1219_v13 = vadd.f32 1e-05, %v1215_v12 }
 0x3d1   :  { %v1212_v14 = vpop.xlane.xlu0 %1211 }
 0x3d2   :  { %2152 = vrsqrt.f32 %v1219_v13  ;;  %v1216_v15 = vmul.f32 0.03125, %v1212_v14 }
 0x3d4   :  { %v2149_v16 = vpop.eup %2148  ;;  %v1220_v17 = vadd.f32 1e-05, %v1216_v15 }
 0x3d5   :  { %v1225_v18 = vmul.f32 %v2149_v16, %v1193_v39 }
 0x3d6   :  { %2154 = vrsqrt.f32 %v1220_v17 }
 0x3d7   :  { %v1235_v23 = vmul.f32 %v1764_v19, %v1225_v18 }
 0x3d8   :  { %v2151_v26 = vpop.eup %2150 }
 0x3d9   :  { %v1226_v21 = vmul.f32 %v2151_v26, %v1194_v43  ;;  %v1245_v27 = vadd.f32 %v1765_v46, %v1235_v23 }
 0x3db   :  { %v1236_v25 = vmul.f32 %v1764_v19, %v1226_v21 }
 0x3dd   :  { %v1246_v28 = vadd.f32 %v1765_v46, %v1236_v25 }
 0x3df   :  { %v2153_v33 = vpop.eup %2152  ;;  %v1249_v20 = vpack.c.bf16 %v1246_v28, %v1245_v27 }
 0x3e0   :  { %v1227_v22 = vmul.f32 %v2153_v33, %v1195_v31 }
 0x3e1   :  { %2053 = vmatprep.mubr.msk.bf16.mxu0 %vm994_vm0, %v1249_v20 }
 0x3e2   :  { %v1237_v24 = vmul.f32 %v1764_v19, %v1227_v22 }
 0x3e3   :  { %v2155_v55 = vpop.eup %2154 }
 0x3e4   :  { %v1228_v37 = vmul.f32 %v2155_v55, %v1196_v1  ;;  %v1247_v44 = vadd.f32 %v1765_v46, %v1237_v24 }
 0x3e6   :  { %v1238_v40 = vmul.f32 %v1764_v19, %v1228_v37 }
 0x3e8   :  { %v1248_v45 = vadd.f32 %v1765_v46, %v1238_v40 }
 0x3ea   :  { %v1250_v32 = vpack.c.bf16 %v1248_v45, %v1247_v44 }
 0x3ec   :  { %2054 = vmatmul.mubr.msk.bf16.vlgmr.msra.gmra.mxu0 %vm994_vm0, %v1250_v32 }
 0x3ed   :  { %2058 = vmatpush3.bf16.msra.mxu0 %v2144_v48 }
 0x3ee   :  { %2059 = vmatprep.subr.bf16.mxu0 %v2145_v49 }
 0x3f1   :  { %2060 = vmatpush3.bf16.msra.mxu0 %v2145_v49 }
 0x4ac   :  { %v2055_v53 = vpop.f32.mrf.mxu0 }
 0x4ad   :  { %v1318_v62 = vadd.f32 %v2055_v53, %v1766_v59 }
 0x4ae   :  { %v1309_v54 = vpop.f32.mrf.mxu0 }
 0x4af   :  { %v1310_v0 = vadd.f32 %v1766_v59, %v1309_v54  ;;  %v1326_v42 = vmax.f32 %v1318_v62, 0.0 }
 0x4b0   :  { %v2056_v60 = vpop.f32.mrf.mxu0 }
 0x4b1   :  { %v1321_v61 = vadd.f32 %v2056_v60, %v1766_v59  ;;  %v1324_v41 = vmax.f32 %v1310_v0, 0.0 }
 0x4b2   :  { %v1312_v63 = vpop.f32.mrf.mxu0 }
 0x4b3   :  { %v1313_v36 = vadd.f32 %v1766_v59, %v1312_v63  ;;  %v1327_v39 = vmax.f32 %v1321_v61, 0.0  ;;  %v1048_v61 = vld [vmem:[%s3006_s13 + $0x8] sm:$0xff]  ;;  %v1049_v63 = vld [vmem:[%s3006_s13 + $0x10] sm:$0xff] }
 0x4b5   :  { %v1325_v29 = vmax.f32 %v1313_v36, 0.0  ;;  %v1329_v47 = vpack.c.bf16 %v1327_v39, %v1326_v42  ;;  %v1047_v42 = vld [vmem:[%s3006_s13] sm:$0xff] }
 0x4b6   :  { %v1530_v50 = vmul.f32 -0.5, %v1047_v42 }
 0x4b7   :  { %v1328_v43 = vpack.c.bf16 %v1325_v29, %v1324_v41  ;;  %v1532_v41 = vmul.f32 -0.5, %v1049_v63  ;;  %v1531_v29 = vmul.f32 -0.5, %v1048_v61 }
 0x4b9   :  { %2061 = vmatprep.mubr.msk.bf16.mxu0 %vm994_vm0, %v1328_v43  ;;  %v1050_v43 = vld [vmem:[%s3006_s13 + $0x18] sm:$0xff]  ;;  %s2237_s13 = smov 8  }
 0x4ba   :  { %2062 = vmatmul.mubr.msk.bf16.vlgmr.msra.gmra.mxu0 %vm994_vm0, %v1329_v47 }
 0x57a   :  { %v2063_v56 = vpop.f32.mrf.mxu0 }
 0x57b   :  { %v1397_v52 = vadd.f32 %v2063_v56, %v1771_v58 }
 0x57c   :  { %v1388_v57 = vpop.f32.mrf.mxu0 }
 0x57d   :  { %v1389_v34 = vadd.f32 %v1771_v58, %v1388_v57  ;;  %v1405_v5 = vmax.f32 %v1397_v52, 0.0  ;;  %v1533_v52 = vmul.f32 -0.5, %v1050_v43 }
 0x57e   :  { %v2064_v31 = vpop.f32.mrf.mxu0 }
 0x57f   :  { %v1400_v30 = vadd.f32 %v2064_v31, %v1771_v58  ;;  %v1403_v35 = vmax.f32 %v1389_v34, 0.0  ;;  %v1536_v34 = vmul.f32 %v1532_v41, %v1049_v63 }
 0x580   :  { %v1391_v1 = vpop.f32.mrf.mxu0 }
 0x581   :  { %v1392_v2 = vadd.f32 %v1771_v58, %v1391_v1  ;;  %v1406_v4 = vmax.f32 %v1400_v30, 0.0  ;;  %v1535_v30 = vmul.f32 %v1531_v29, %v1048_v61 }
 0x583   :  { %v1404_v3 = vmax.f32 %v1392_v2, 0.0  ;;  %v1408_v7 = vpack.c.bf16 %v1406_v4, %v1405_v5  ;;  %v1534_v2 = vmul.f32 %v1530_v50, %v1047_v42 }
 0x585   :  { %v1407_v6 = vpack.c.bf16 %v1404_v3, %v1403_v35 }
 0x587   :  { %2069 = vmatprep.mubr.msk.bf16.mxu1 %vm994_vm0, %v1407_v6 }
 0x588   :  { %2070 = vmatmul.mubr.msk.bf16.vlgmr.msra.gmra.mxu1 %vm994_vm0, %v1408_v7 }
 0x648   :  { %v2071_v38 = vpop.f32.mrf.mxu1 }
 0x649   :  { %v2922_v9 = vadd.f32 %v2071_v38, %v1776_v8 }
 0x64a   :  { %v1467_v10 = vpop.f32.mrf.mxu1 }
 0x64b   :  { %2156 = vtanh.f32 %v2922_v9  ;;  %v2925_v11 = vadd.f32 %v1776_v8, %v1467_v10 }
 0x64c   :  { %v2072_v12 = vpop.f32.mrf.mxu1 }
 0x64d   :  { %2158 = vtanh.f32 %v2925_v11  ;;  %v2928_v13 = vadd.f32 %v2072_v12, %v1776_v8 }
 0x64e   :  { %v1470_v14 = vpop.f32.mrf.mxu1 }
 0x64f   :  { %2160 = vtanh.f32 %v2928_v13  ;;  %v1471_v15 = vadd.f32 %v1776_v8, %v1470_v14  ;;  %v1537_v8 = vmul.f32 %v1533_v52, %v1050_v43 }
 0x651   :  { %2162 = vtanh.f32 %v1471_v15 }
 0x658   :  { %v2157_v16 = vpop.eup %2156 }
 0x659   :  { %v1488_v17 = vadd.f32 1.0, %v2157_v16 }
 0x65a   :  { %v2159_v18 = vpop.eup %2158 }
 0x65b   :  { %v1492_v19 = vmul.f32 6.0, %v1488_v17  ;;  %v1486_v26 = vadd.f32 1.0, %v2159_v18 }
 0x65c   :  { %v2161_v21 = vpop.eup %2160 }
 0x65d   :  { %v1496_v23 = vadd.f32 -10.0, %v1492_v19  ;;  %v1490_v46 = vmul.f32 6.0, %v1486_v26  ;;  %v1489_v25 = vadd.f32 1.0, %v2161_v21 }
 0x65e   :  { %v2163_v27 = vpop.eup %2162 }
 0x65f   :  { %v1494_v28 = vadd.f32 -10.0, %v1490_v46  ;;  %v1493_v33 = vmul.f32 6.0, %v1489_v25  ;;  %v1487_v20 = vadd.f32 1.0, %v2163_v27  ;;  %v2932_v22 = vsel %vm1558_vm3, %v2157_v16, %v1496_v23 }
 0x660   :  { %v1502_v40 = vmul.f32 1.442695, %v1496_v23 }
 0x661   :  { %v1498_v55 = vmul.f32 1.442695, %v1494_v28  ;;  %v1497_v37 = vadd.f32 -10.0, %v1493_v33  ;;  %v1491_v24 = vmul.f32 6.0, %v1487_v20  ;;  %v2935_v44 = vsel %vm1558_vm3, %v2159_v18, %v1494_v28 }
 0x663   :  { %2164 = vpow2.f32 %v1498_v55  ;;  %v1495_v45 = vadd.f32 -10.0, %v1491_v24  ;;  %v2938_v32 = vsel %vm1558_vm3, %v2161_v21, %v1497_v37  ;;  %v1504_v51 = vmul.f32 1.442695, %v1497_v37 }
 0x664   :  { %2166 = vpow2.f32 %v1502_v40 }
 0x665   :  { %v1500_v48 = vmul.f32 1.442695, %v1495_v45  ;;  %v2941_v49 = vsel %vm1558_vm3, %v2163_v27, %v1495_v45 }
 0x667   :  { %2168 = vpow2.f32 %v1500_v48 }
 0x668   :  { %2170 = vpow2.f32 %v1504_v51 }
 0x670   :  { %v2165_v53 = vpop.eup %2164 }
 0x671   :  { %1510 = vrot.lane.b32.xlu1 %v2165_v53, %s2236_s10  ;;  %v2167_v54 = vpop.eup %2166 }
 0x674   :  { %v2169_v59 = vpop.eup %2168 }
 0x675   :  { %1512 = vrot.lane.b32.xlu0 %v2169_v59, %s2236_s10  ;;  %1514 = vrot.lane.b32.xlu1 %v2167_v54, %s2236_s10  ;;  %v2171_v60 = vpop.eup %2170 }
 0x679   :  { %1542 = vrot.lane.b32.xlu0 %v1494_v28, %s2236_s10  ;;  %1516 = vrot.lane.b32.xlu1 %v2171_v60, %s2236_s10 }
 0x67d   :  { %1546 = vrot.lane.b32.xlu0 %v1496_v23, %s2236_s10  ;;  %1544 = vrot.lane.b32.xlu1 %v1495_v45, %s2236_s10 }
 0x681   :  { %1548 = vrot.lane.b32.xlu1 %v1497_v37, %s2236_s10 }
 0x6e3   :  { %v1511_v0 = vpop.permute.xlu1 %1510 }
 0x6e4   :  { %v1522_v1 = vmul.f32 %v1511_v0, %v1047_v42 }
 0x6e6   :  { %v1526_v38 = vadd.f32 %v1522_v1, %v2925_v11 }
 0x6e7   :  { %v1513_v62 = vpop.permute.xlu0 %1512  ;;  %v1515_v36 = vpop.permute.xlu1 %1514 }
 0x6e8   :  { %v1523_v39 = vmul.f32 %v1513_v62, %v1048_v61  ;;  %v1524_v56 = vmul.f32 %v1515_v36, %v1049_v63 }
 0x6ea   :  { %v1527_v47 = vadd.f32 %v1523_v39, %v1471_v15  ;;  %v1528_v35 = vadd.f32 %v1524_v56, %v2922_v9 }
 0x6eb   :  { %v1543_v57 = vpop.permute.xlu0 %1542  ;;  %v1517_v58 = vpop.permute.xlu1 %1516 }
 0x6ec   :  { %2172 = vtanh.f32 %v1527_v47  ;;  %v1525_v31 = vmul.f32 %v1517_v58, %v1050_v43  ;;  %v1554_v10 = vsub.f32 %v1534_v2, %v1543_v57 }
 0x6ee   :  { %v1529_v4 = vadd.f32 %v1525_v31, %v2928_v13  ;;  %v1559_v9 = vsel %vm1558_vm3, %v1554_v10, 0.0 }
 0x6ef   :  { %v1547_v3 = vpop.permute.xlu0 %1546  ;;  %v1545_v5 = vpop.permute.xlu1 %1544 }
 0x6f0   :  { %2174 = vtanh.f32 %v1529_v4  ;;  %v1556_v6 = vsub.f32 %v1536_v34, %v1547_v3  ;;  %v1555_v7 = vsub.f32 %v1535_v30, %v1545_v5 }
 0x6f1   :  { %2176 = vtanh.f32 %v1528_v35 }
 0x6f2   :  { %v1565_v12 = vsel %vm1558_vm3, %v1556_v6, 0.0  ;;  %v1562_v14 = vsel %vm1558_vm3, %v1555_v7, 0.0  ;;  %2178 = vtanh.f32 %v1526_v38 }
 0x6f3   :  { %1566 = vadd.xlane.f32.xlu0 %v1565_v12  ;;  %1563 = vadd.xlane.f32.xlu1 %v1562_v14  ;;  %v1549_v15 = vpop.permute.xlu1 %1548 }
 0x6f4   :  { %v1557_v13 = vsub.f32 %v1537_v8, %v1549_v15 }
 0x6f6   :  { %v1568_v17 = vsel %vm1558_vm3, %v1557_v13, 0.0 }
 0x6f7   :  { %1560 = vadd.xlane.f32.xlu0 %v1559_v9 }
 0x6f9   :  { %v2173_v16 = vpop.eup %2172 }
 0x6fa   :  { %v1580_v18 = vmul.f32 %v2173_v16, %v2173_v16 }
 0x6fb   :  { %1569 = vadd.xlane.f32.xlu0 %v1568_v17 }
 0x6fc   :  { %v1584_v11 = vsub.f32 1.0, %v1580_v18 }
 0x6fd   :  { %v2175_v19 = vpop.eup %2174 }
 0x6fe   :  { %v1582_v26 = vmul.f32 %v2175_v19, %v2175_v19  ;;  %v1588_v21 = vmax.f32 %v1584_v11, 0.0  ;;  %v2177_v23 = vpop.eup %2176 }
 0x6ff   :  { %v2179_v28 = vpop.eup %2178  ;;  %v1581_v33 = vmul.f32 %v2177_v23, %v2177_v23 }
 0x700   :  { %v1586_v46 = vsub.f32 1.0, %v1582_v26  ;;  %v1592_v25 = vadd.f32 1e-06, %v1588_v21  ;;  %v1579_v37 = vmul.f32 %v2179_v28, %v2179_v28 }
 0x701   :  { %v1585_v55 = vsub.f32 1.0, %v1581_v33 }
 0x702   :  { %v1590_v27 = vmax.f32 %v1586_v46, 0.0  ;;  %2180 = vlog2.f32 %v1592_v25  ;;  %v1583_v40 = vsub.f32 1.0, %v1579_v37 }
 0x703   :  { %v1589_v24 = vmax.f32 %v1585_v55, 0.0 }
 0x704   :  { %1635 = vrot.lane.b32.xlu1 %v2179_v28, %s2237_s13  ;;  %v1594_v20 = vadd.f32 1e-06, %v1590_v27  ;;  %v1587_v48 = vmax.f32 %v1583_v40, 0.0 }
 0x705   :  { %v1593_v45 = vadd.f32 1e-06, %v1589_v24 }
 0x706   :  { %2182 = vlog2.f32 %v1594_v20  ;;  %v1591_v54 = vadd.f32 1e-06, %v1587_v48 }
 0x707   :  { %2184 = vlog2.f32 %v1593_v45 }
 0x708   :  { %2186 = vlog2.f32 %v1591_v54 }
 0x70f   :  { %v2181_v51 = vpop.eup %2180 }
 0x710   :  { %v1598_v0 = vmul.f32 0.6931472, %v2181_v51 }
 0x712   :  { %v1606_v61 = vsel %vm1558_vm3, %v1598_v0, 0.0 }
 0x713   :  { %v2183_v53 = vpop.eup %2182 }
 0x714   :  { %v1602_v59 = vmul.f32 0.6931472, %v2183_v53  ;;  %v2185_v62 = vpop.eup %2184 }
 0x715   :  { %v1600_v63 = vmul.f32 0.6931472, %v2185_v62  ;;  %v2187_v36 = vpop.eup %2186 }
 0x716   :  { %v1612_v60 = vsel %vm1558_vm3, %v1602_v59, 0.0  ;;  %v1596_v41 = vmul.f32 0.6931472, %v2187_v36 }
 0x717   :  { %1613 = vadd.xlane.f32.xlu0 %v1612_v60  ;;  %v1609_v39 = vsel %vm1558_vm3, %v1600_v63, 0.0 }
 0x718   :  { %v1603_v29 = vsel %vm1558_vm3, %v1596_v41, 0.0 }
 0x71b   :  { %1607 = vadd.xlane.f32.xlu0 %v1606_v61 }
 0x728   :  { %1610 = vadd.xlane.f32.xlu1 %v1609_v39 }
 0x72c   :  { %1604 = vadd.xlane.f32.xlu1 %v1603_v29 }
 0x731   :  { %1637 = vrot.lane.b32.xlu0 %v2173_v16, %s2237_s13 }
 0x73d   :  { %1639 = vrot.lane.b32.xlu1 %v2177_v23, %s2237_s13 }
 0x741   :  { %1641 = vrot.lane.b32.xlu1 %v2175_v19, %s2237_s13 }
 0x742   :  { %2199 = shalt.err (!%p2196_p4)
}
 0x743   :  { %s2239_s23 = smov 256   ;;  %s2240_s24 = smov 16   ;;  %vm1656_vm4 = vcmask 97280   ;;  %vm1651_vm5 = vcmask 64512   ;;  %vm1661_vm6 = vcmask 105472  }
 0x744   :  { %1681 = dma.vmem_to_hbm [thread:$0]  %s1676_s7, 1024, %s3007_s14, [#allocation3], %s2239_s23, %s2239_s23, %s2240_s24  }
 0x745   :  { %s2241_s14 = smov [#allocation4]  }
 0x746   :  { %s1687_s6 = sshll.u32 %s2241_s14, 4  ;;  %s1688_s6 = int_to_ptr.vmem [resolvable:$true] %s1687_s6 }
 0x747   :  { %s2208_s25 = scalar_lea.vmem %s1688_s6, 512  ;;  %p2213_p6 = scmp.lt.s32.totalorder %s1688_s6, %s1688_s6 }
 0x748   :  { %p2209_p5 = scmp.ne.s32.totalorder %s1688_s6, %s2208_s25  ;;  %p2214_p7 = scmp.lt.s32.totalorder %s2208_s25, %s2208_s25 }
 0x74a   :  { %p2215_p8 = por %p2214_p7, %p2213_p6 }
 0x74c   :  { %p2216_p9 = pnand %p2215_p8, %p2209_p5 }
 0x77c   :  { %v1567_v42 = vpop.xlane.xlu0 %1566  ;;  %v1564_v56 = vpop.xlane.xlu1 %1563 }
 0x77d   :  { %v1782_v58 = vadd.f32 -3.675754, %v1564_v56  ;;  %v1783_v6 = vadd.f32 -3.675754, %v1567_v42 }
 0x780   :  { %v1561_v43 = vpop.xlane.xlu0 %1560  ;;  %v1636_v2 = vpop.permute.xlu1 %1635 }
 0x781   :  { %v1781_v35 = vadd.f32 -3.675754, %v1561_v43  ;;  %v1652_v7 = vsel %vm1651_vm5, %v2935_v44, %v1636_v2 }
 0x784   :  { %v1570_v47 = vpop.xlane.xlu0 %1569 }
 0x785   :  { %v1784_v14 = vadd.f32 -3.675754, %v1570_v47 }
 0x7a0   :  { %v1614_v50 = vpop.xlane.xlu0 %1613 }
 0x7a1   :  { %v1618_v9 = vsub.f32 %v1784_v14, %v1614_v50 }
 0x7a4   :  { %v1608_v57 = vpop.xlane.xlu0 %1607 }
 0x7a5   :  { %v1616_v31 = vsub.f32 %v1782_v58, %v1608_v57 }
 0x7a8   :  { %v1638_v34 = vpop.permute.xlu0 %1637 }
 0x7a9   :  { %v1653_v30 = vsel %vm1651_vm5, %v2941_v49, %v1638_v34 }
 0x7aa   :  { %v1658_v52 = vsel %vm1656_vm4, %v1653_v30, %v1616_v31 }
 0x7ab   :  { %v1663_v1 = vsel %vm1661_vm6, %v1658_v52, 0.0 }
 0x7ac   :  { %1667 = vst [vmem:[#allocation4 + $0x8] sm:$0xff] %v1663_v1 }
 0x7b1   :  { %v1611_v4 = vpop.xlane.xlu1 %1610 }
 0x7b2   :  { %v1617_v38 = vsub.f32 %v1783_v6, %v1611_v4 }
 0x7b5   :  { %v1605_v3 = vpop.xlane.xlu1 %1604 }
 0x7b6   :  { %v1615_v5 = vsub.f32 %v1781_v35, %v1605_v3 }
 0x7b8   :  { %v1657_v8 = vsel %vm1656_vm4, %v1652_v7, %v1615_v5 }
 0x7b9   :  { %v1662_v10 = vsel %vm1661_vm6, %v1657_v8, 0.0  ;;  %v1640_v49 = vpop.permute.xlu1 %1639 }
 0x7ba   :  { %1666 = vst [vmem:[#allocation4] sm:$0xff] %v1662_v10  ;;  %v1654_v12 = vsel %vm1651_vm5, %v2932_v22, %v1640_v49 }
 0x7bb   :  { %v1659_v15 = vsel %vm1656_vm4, %v1654_v12, %v1617_v38 }
 0x7bc   :  { %v1664_v13 = vsel %vm1661_vm6, %v1659_v15, 0.0 }
 0x7bd   :  { %1668 = vst [vmem:[#allocation4 + $0x10] sm:$0xff] %v1664_v13  ;;  %v1642_v44 = vpop.permute.xlu1 %1641 }
 0x7be   :  { %v1655_v16 = vsel %vm1651_vm5, %v2938_v32, %v1642_v44 }
 0x7bf   :  { %v1660_v17 = vsel %vm1656_vm4, %v1655_v16, %v1618_v9 }
 0x7c0   :  { %v1665_v18 = vsel %vm1661_vm6, %v1660_v17, 0.0 }
 0x7c1   :  { %1669 = vst [vmem:[#allocation4 + $0x18] sm:$0xff] %v1665_v18 }
 0x7c2   :  { %2219 = shalt.err (!%p2216_p9)
}
 0x7c3   :  { %s2242_s26 = smov 128  }
 0x7c4   :  { %1693 = dma.vmem_to_hbm [thread:$0]  %s1688_s6, 512, %s3008_s15, [#allocation5], %s2242_s26, %s2242_s26, %s2237_s13  }
 0x7c5   :  { %2228 = dma.done.wait [#allocation3], 1024  }
 0x7c6   :  { %2229 = vsyncadd [#allocation3], 4294966272 }
 0x7c7   :  { %2230 = dma.done.wait [#allocation5], 512  }
 0x7c8   :  { %2231 = vsyncadd [#allocation5], 4294966784 }
 0x7c9   :  { %1700 = vsyncpa [#allocation3], 1 }
 0x7ca   :  { %1701 = vsyncpa [#allocation5], 1 }

</bundles_post_ra>
